<compile_context>
chip_gen: v5e
topology: v5e:2x2
jax: 0.10.0
libtpu: 0.0.40
codegen_flags: <defaults>
</compile_context>

<pallas_src>
from copy import copy
from dataclasses import dataclass

import numpy as np
import jax
import jax.numpy as jnp
from jax import lax
from jax.experimental import pallas as pl
from jax.experimental.pallas import tpu as pltpu


# OGB molecule feature vocabulary sizes (from ogb.utils.features).
ATOM_FEATURE_DIMS = [119, 5, 12, 12, 10, 6, 6, 2, 2]   # 9 atom features
BOND_FEATURE_DIMS = [5, 6, 3]                           # 3 bond features

STRIP = 128  # vocab strip width == per-strip matmul K == lane width


def _round_up(x, m):
    return (x + m - 1) // m * m


def _choose_tile_n(n_rows, max_tile_n=512):
    """Rows per grid step: big tiles (per-step overhead ~0.35 us dominates small
    ones) but keep >= 2 grid steps when rows allow so the 'parallel' axis can be
    sharded across v7x's two TensorCores."""
    base = max(STRIP, _round_up(max(n_rows, 1), STRIP))
    tile = min(max_tile_n, base)
    if base >= 2 * STRIP and tile * 2 > base:
        tile = max(STRIP, (base // 2) // STRIP * STRIP)
    return tile


# ----------------------------------------------------------------------------
# Packed-table layout: 128-wide strips, no feature straddles a strip boundary.
# ----------------------------------------------------------------------------
def make_strip_layout(feature_dims, strip_width=STRIP):
    """Returns (per-feature row offsets, per-strip feature-id tuples, v_pad).
    Row 0 of strip 0 is the reserved all-zero padding row."""
    offsets, strips = [], []
    off = 1                                     # index 0 reserved (zero row)
    for f, v in enumerate(feature_dims):
        assert v < strip_width
        if off % strip_width + v > strip_width:  # would straddle -> next strip
            off = _round_up(off, strip_width)
        s = off // strip_width
        while len(strips) <= s:
            strips.append([])
        strips[s].append(f)
        offsets.append(off)
        off += v
    v_pad = len(strips) * strip_width
    return np.asarray(offsets, np.int32), tuple(tuple(s) for s in strips), v_pad


def make_packed_table(key, feature_dims, emb_dim, offsets, v_pad, dtype):
    tab = jnp.zeros((v_pad, emb_dim), jnp.float32)
    for i, v in enumerate(feature_dims):
        w = jax.random.normal(jax.random.fold_in(key, i), (v, emb_dim),
                              jnp.float32) * 0.02
        tab = lax.dynamic_update_slice(tab, w, (int(offsets[i]), 0))
    # Rows not covered by any feature (incl. row 0) stay exactly zero.
    return tab.astype(dtype)


# ----------------------------------------------------------------------------
# Pallas kernel: per-strip OR-mask multi-hot + one (TN,128)@(128,D) dot each.
# ----------------------------------------------------------------------------
def _make_embed_kernel(feat_strips, matmul_precision):
    def kernel(idx_ref, tab_ref, out_ref):
        # idx_ref: (TN, F) int32 indices already offset into the packed vocab
        # tab_ref: (V_pad, D) packed table (V_pad = 128 * n_strips, row 0 zero)
        # out_ref: (TN, D) f32 summed embeddings for this tile
        tn = idx_ref.shape[0]
        idx = idx_ref[...]
        acc = None
        for s, feats in enumerate(feat_strips):          # static (1 or 2 strips)
            base = s * STRIP
            col = base + lax.broadcasted_iota(jnp.int32, (tn, STRIP), 1)
            # Boolean OR of per-feature compares; disjoint ranges => OR == add.
            hot = idx[:, feats[0]:feats[0] + 1] == col
            for f in feats[1:]:
                hot = jnp.logical_or(hot, idx[:, f:f + 1] == col)
            # Single cast, then one MXU dot against this strip's table rows
            # (static, tile-aligned slice of the VMEM-resident table).
            part = jnp.dot(hot.astype(tab_ref.dtype),
                           tab_ref[base:base + STRIP, :],
                           preferred_element_type=jnp.float32,
                           precision=matmul_precision)
            acc = part if acc is None else acc + part
        out_ref[...] = acc.astype(out_ref.dtype)
    return kernel


def embed_rows(indices, table, feat_strips, *, tile_n, matmul_precision):
    """indices: [N_pad, F] int32 (packed-vocab indices, N_pad % tile_n == 0);
    table: [V_pad, D] -> [N_pad, D] float32."""
    n, num_feat = indices.shape
    v_pad, d = table.shape
    assert n % tile_n == 0
    assert v_pad == len(feat_strips) * STRIP
    kernel = _make_embed_kernel(feat_strips, matmul_precision)
    return pl.pallas_call(
        kernel,
        out_shape=jax.ShapeDtypeStruct((n, d), jnp.float32),
        grid_spec=pl.GridSpec(
            grid=(n // tile_n,),
            in_specs=[
                pl.BlockSpec((tile_n, num_feat), lambda i: (i, 0)),
                # Grid-invariant packed table (<=128 KiB); lane-dense 2D.
                pl.BlockSpec((v_pad, d), lambda i: (0, 0)),
            ],
            out_specs=pl.BlockSpec((tile_n, d), lambda i: (i, 0)),
        ),
        compiler_params=pltpu.CompilerParams(
            dimension_semantics=("parallel",)),
    )(indices, table)


# ----------------------------------------------------------------------------
# Module wrapper
# ----------------------------------------------------------------------------
@dataclass
class GraphData:
    x: jnp.ndarray          # atom features / embeddings
    edge_attr: jnp.ndarray  # bond features / embeddings


class OGBMolEmbeddingPallas:
    """Pallas port of OGBMolEmbedding: atom + bond embedding sums."""

    def __init__(self, dim, key, max_tile_n=512, table_dtype=jnp.float32):
        # table_dtype=jnp.bfloat16 is the v6e/v7x fast path (changes numerics).
        self.dim = dim
        self.max_tile_n = max_tile_n
        a_off, self.atom_strips, a_vpad = make_strip_layout(ATOM_FEATURE_DIMS)
        b_off, self.bond_strips, b_vpad = make_strip_layout(BOND_FEATURE_DIMS)
        self.atom_offsets = jnp.asarray(a_off)
        self.bond_offsets = jnp.asarray(b_off)
        self.atom_table = make_packed_table(jax.random.fold_in(key, 0),
                                            ATOM_FEATURE_DIMS, dim,
                                            a_off, a_vpad, table_dtype)
        self.bond_table = make_packed_table(jax.random.fold_in(key, 1),
                                            BOND_FEATURE_DIMS, dim,
                                            b_off, b_vpad, table_dtype)
        # Invariant: padded rows / padded features select packed row 0, which
        # must be exactly zero so they contribute nothing.
        assert bool(jnp.all(self.atom_table[0] == 0))
        assert bool(jnp.all(self.bond_table[0] == 0))
        # f32 table -> explicit highest-precision MXU path (matches the gather
        # reference); bf16 table -> default (full-rate) bf16 MXU.
        self.matmul_precision = (lax.Precision.HIGHEST
                                 if table_dtype == jnp.float32 else None)

    def _embed(self, feats, offsets, table, strips):
        n = feats.shape[0]
        tile_n = _choose_tile_n(n, self.max_tile_n)
        n_pad = max(tile_n, _round_up(max(n, 1), tile_n))
        idx = feats.astype(jnp.int32) + offsets[None, :]
        idx = jnp.pad(idx, ((0, n_pad - n), (0, 0)))   # pad rows -> index 0
        out = embed_rows(idx, table, strips, tile_n=tile_n,
                         matmul_precision=self.matmul_precision)
        return out[:n]                                  # trim only padding tail

    def __call__(self, data: GraphData) -> GraphData:
        data = copy(data)
        x = self._embed(data.x, self.atom_offsets, self.atom_table,
                        self.atom_strips)
        e = self._embed(data.edge_attr, self.bond_offsets, self.bond_table,
                        self.bond_strips)
        return GraphData(x=x, edge_attr=e)


# Pure-JAX reference (gather + sum against the same packed tables).
def embed_sum_ref(indices, packed_table, offsets):
    f = indices.shape[1]
    return sum(packed_table[offsets[i] + indices[:, i]] for i in range(f))


if __name__ == "__main__":
    key = jax.random.PRNGKey(0)
    k_params, k_x, k_e = jax.random.split(key, 3)

    DIM = 128        # embedding dim (lane axis)
    N_NODES = 70     # not a tile multiple -> exercises row padding
    N_EDGES = 150    # pads to 256 -> 2 grid steps on the bond call

    model = OGBMolEmbeddingPallas(DIM, k_params)

    # Synthetic categorical features within each feature's vocabulary.
    x_cols = [
        jax.random.randint(jax.random.fold_in(k_x, i), (N_NODES,), 0, v, jnp.int32)
        for i, v in enumerate(ATOM_FEATURE_DIMS)
    ]
    e_cols = [
        jax.random.randint(jax.random.fold_in(k_e, i), (N_EDGES,), 0, v, jnp.int32)
        for i, v in enumerate(BOND_FEATURE_DIMS)
    ]
    data = GraphData(x=jnp.stack(x_cols, axis=1),
                     edge_attr=jnp.stack(e_cols, axis=1))

    out = model(data)
    jax.block_until_ready(out.x)
    jax.block_until_ready(out.edge_attr)

    # Verify against the pure-JAX gather reference.
    ref_x = embed_sum_ref(data.x, model.atom_table.astype(jnp.float32),
                          model.atom_offsets)
    ref_e = embed_sum_ref(data.edge_attr, model.bond_table.astype(jnp.float32),
                          model.bond_offsets)
    assert out.x.shape == (N_NODES, DIM) and out.edge_attr.shape == (N_EDGES, DIM)
    assert jnp.allclose(out.x, ref_x, atol=1e-5)
    assert jnp.allclose(out.edge_attr, ref_e, atol=1e-5)

    print("KERNEL_OK")
</pallas_src>

<mosaic_0001>
module attributes {stable_mosaic.version = 11 : i64} {
  func.func @kernel(%arg0: i32, %arg1: memref<128x9xi32, #tpu.memory_space<vmem>>, %arg2: memref<256x128xf32, #tpu.memory_space<vmem>>, %arg3: memref<128x128xf32, #tpu.memory_space<vmem>>) attributes {dimension_semantics = [#tpu.dimension_semantics<parallel>], iteration_bounds = array<i64: 1>, scalar_prefetch = 0 : i64, scratch_operands = 0 : i64, tpu.core_type = #tpu.core_type<tc>, window_params = [{transform_indices = @transform_0, window_bounds = array<i64: 128, 9>}, {pipeline_mode = #tpu.pipeline_mode<synchronous>, transform_indices = @transform_1, window_bounds = array<i64: 256, 128>}, {transform_indices = @transform_2, window_bounds = array<i64: 128, 128>}]} {
    %c0 = arith.constant 0 : index
    %c0_0 = arith.constant 0 : index
    %0 = vector.load %arg1[%c0, %c0_0] : memref<128x9xi32, #tpu.memory_space<vmem>>, vector<128x9xi32>
    %1 = tpu.iota {dimensions = array<i32: 1>} : vector<128x128xi32>
    %c0_i32 = arith.constant 0 : i32
    %2 = vector.broadcast %c0_i32 : i32 to vector<128x128xi32>
    %3 = arith.addi %2, %1 : vector<128x128xi32>
    %4 = vector.extract_strided_slice %0 {offsets = [0, 0], sizes = [128, 1], strides = [1, 1]} : vector<128x9xi32> to vector<128x1xi32>
    %5 = vector.broadcast %4 : vector<128x1xi32> to vector<128x128xi32>
    %6 = arith.cmpi eq, %5, %3 : vector<128x128xi32>
    %7 = vector.extract_strided_slice %0 {offsets = [0, 1], sizes = [128, 1], strides = [1, 1]} : vector<128x9xi32> to vector<128x1xi32>
    %8 = vector.broadcast %7 : vector<128x1xi32> to vector<128x128xi32>
    %9 = arith.cmpi eq, %8, %3 : vector<128x128xi32>
    %10 = arith.ori %6, %9 : vector<128x128xi1>
    %11 = arith.extui %10 : vector<128x128xi1> to vector<128x128xi32>
    %12 = arith.sitofp %11 : vector<128x128xi32> to vector<128x128xf32>
    %c0_1 = arith.constant 0 : index
    %c0_2 = arith.constant 0 : index
    %13 = vector.load %arg2[%c0_1, %c0_2] : memref<256x128xf32, #tpu.memory_space<vmem>>, vector<128x128xf32>
    %cst = arith.constant dense<0.000000e+00> : vector<128x128xf32>
    %14 = tpu.matmul %12, %13, %cst {dimension_numbers = #tpu.dot_dimension_numbers<[1], [0], [0], [1], [0, 0, 1, 1], [], []>, precision = #tpu.contract_precision<fp32>} : vector<128x128xf32>, vector<128x128xf32>, vector<128x128xf32> -> vector<128x128xf32>
    %15 = tpu.iota {dimensions = array<i32: 1>} : vector<128x128xi32>
    %c128_i32 = arith.constant 128 : i32
    %16 = vector.broadcast %c128_i32 : i32 to vector<128x128xi32>
    %17 = arith.addi %16, %15 : vector<128x128xi32>
    %18 = vector.extract_strided_slice %0 {offsets = [0, 2], sizes = [128, 1], strides = [1, 1]} : vector<128x9xi32> to vector<128x1xi32>
    %19 = vector.broadcast %18 : vector<128x1xi32> to vector<128x128xi32>
    %20 = arith.cmpi eq, %19, %17 : vector<128x128xi32>
    %21 = vector.extract_strided_slice %0 {offsets = [0, 3], sizes = [128, 1], strides = [1, 1]} : vector<128x9xi32> to vector<128x1xi32>
    %22 = vector.broadcast %21 : vector<128x1xi32> to vector<128x128xi32>
    %23 = arith.cmpi eq, %22, %17 : vector<128x128xi32>
    %24 = arith.ori %20, %23 : vector<128x128xi1>
    %25 = vector.extract_strided_slice %0 {offsets = [0, 4], sizes = [128, 1], strides = [1, 1]} : vector<128x9xi32> to vector<128x1xi32>
    %26 = vector.broadcast %25 : vector<128x1xi32> to vector<128x128xi32>
    %27 = arith.cmpi eq, %26, %17 : vector<128x128xi32>
    %28 = arith.ori %24, %27 : vector<128x128xi1>
    %29 = vector.extract_strided_slice %0 {offsets = [0, 5], sizes = [128, 1], strides = [1, 1]} : vector<128x9xi32> to vector<128x1xi32>
    %30 = vector.broadcast %29 : vector<128x1xi32> to vector<128x128xi32>
    %31 = arith.cmpi eq, %30, %17 : vector<128x128xi32>
    %32 = arith.ori %28, %31 : vector<128x128xi1>
    %33 = vector.extract_strided_slice %0 {offsets = [0, 6], sizes = [128, 1], strides = [1, 1]} : vector<128x9xi32> to vector<128x1xi32>
    %34 = vector.broadcast %33 : vector<128x1xi32> to vector<128x128xi32>
    %35 = arith.cmpi eq, %34, %17 : vector<128x128xi32>
    %36 = arith.ori %32, %35 : vector<128x128xi1>
    %37 = vector.extract_strided_slice %0 {offsets = [0, 7], sizes = [128, 1], strides = [1, 1]} : vector<128x9xi32> to vector<128x1xi32>
    %38 = vector.broadcast %37 : vector<128x1xi32> to vector<128x128xi32>
    %39 = arith.cmpi eq, %38, %17 : vector<128x128xi32>
    %40 = arith.ori %36, %39 : vector<128x128xi1>
    %41 = vector.extract_strided_slice %0 {offsets = [0, 8], sizes = [128, 1], strides = [1, 1]} : vector<128x9xi32> to vector<128x1xi32>
    %42 = vector.broadcast %41 : vector<128x1xi32> to vector<128x128xi32>
    %43 = arith.cmpi eq, %42, %17 : vector<128x128xi32>
    %44 = arith.ori %40, %43 : vector<128x128xi1>
    %45 = arith.extui %44 : vector<128x128xi1> to vector<128x128xi32>
    %46 = arith.sitofp %45 : vector<128x128xi32> to vector<128x128xf32>
    %c128 = arith.constant 128 : index
    %c0_3 = arith.constant 0 : index
    %47 = vector.load %arg2[%c128, %c0_3] : memref<256x128xf32, #tpu.memory_space<vmem>>, vector<128x128xf32>
    %cst_4 = arith.constant dense<0.000000e+00> : vector<128x128xf32>
    %48 = tpu.matmul %46, %47, %cst_4 {dimension_numbers = #tpu.dot_dimension_numbers<[1], [0], [0], [1], [0, 0, 1, 1], [], []>, precision = #tpu.contract_precision<fp32>} : vector<128x128xf32>, vector<128x128xf32>, vector<128x128xf32> -> vector<128x128xf32>
    %49 = arith.addf %14, %48 : vector<128x128xf32>
    %c0_5 = arith.constant 0 : index
    %c0_6 = arith.constant 0 : index
    %50 = vector.load %arg3[%c0_5, %c0_6] : memref<128x128xf32, #tpu.memory_space<vmem>>, vector<128x128xf32>
    tpu.vector_store %arg3[%c0_5, %c0_6], %49 {strides = array<i32>} : memref<128x128xf32, #tpu.memory_space<vmem>>, vector<128x128xf32>,
    return
  }
  func.func @transform_0(%arg0: i32) -> (i32, i32) {
    %c0_i32 = arith.constant 0 : i32
    %c0_i32_0 = arith.constant 0 : i32
    return %arg0, %c0_i32 : i32, i32
  }
  func.func @transform_1(%arg0: i32) -> (i32, i32) {
    %c0_i32 = arith.constant 0 : i32
    %c0_i32_0 = arith.constant 0 : i32
    %c0_i32_1 = arith.constant 0 : i32
    return %c0_i32, %c0_i32_0 : i32, i32
  }
  func.func @transform_2(%arg0: i32) -> (i32, i32) {
    %c0_i32 = arith.constant 0 : i32
    %c0_i32_0 = arith.constant 0 : i32
    return %arg0, %c0_i32 : i32, i32
  }
}

</mosaic_0001>

<bundles_post_ra>
// kernel: tpu_custom_call.1
= control target key start
LH: loop header
LB: loop body
LE: loop exit
PB: predicated region body
PF: predicated region fallthrough
CT: control target
= control target key end

     0   :  { %7 = vsyncpa [#allocation3], 0  ;;  %s4671_s0 = inlined_call_operand.vmem [shape: s32[128,9], index: 0, kind: input, shape index: {}]   ;;  %s4672_s1 = inlined_call_operand.hbm [shape: f32[256,128], index: 1, kind: input, shape index: {}]   ;;  %s4673_s2 = inlined_call_operand.hbm [shape: f32[128,128], index: 2, kind: output, shape index: {}]  }
   0x1   :  { %8 = vsyncpa [#allocation4], 0  ;;  %s15_s11 = sshll.u32 %s4672_s1, 4  ;;  %s2730_s12 = smov [#allocation2]   ;;  %s16_s11 = int_to_ptr.hbm [resolvable:$true] %s15_s11 }
   0x2   :  { %s17_s13 = sshll.u32 %s2730_s12, 4  ;;  %s2731_s14 = smov 128   ;;  %s18_s13 = int_to_ptr.vmem [resolvable:$true] %s17_s13 }
   0x3   :  { %s2732_s15 = smov 8  }
   0x4   :  { %23 = dma.hbm_to_vmem [thread:$0]  %s16_s11, 4096, %s18_s13, [#allocation3], %s2731_s14, %s2731_s14, %s2732_s15  }
   0x5   :  { %2726 = dma.done.wait [#allocation3], 4096  }
   0x6   :  { %2727 = vsyncadd [#allocation3], 4294963200  ;;  %v2733_v0 = vmov 0   ;;  %v2769_v1 = vld [vmem:[%s4671_s0 + $0x20] sm:$0xff]  ;;  %v2774_v2 = vld [vmem:[%s4671_s0 + $0x10] sm:$0xff]  ;;  %v2734_v17 = vmov 1   ;;  %v44_v29 = vlaneseq }
   0x7   :  { %2575 = vset.pattern.permute.xlu2 %v2733_v0  ;;  %2574 = vset.pattern.permute.xlu1 %v2733_v0  ;;  %v2779_v3 = vld [vmem:[%s4671_s0] sm:$0xff]  ;;  %v2787_v4 = vld [vmem:[%s4671_s0 + $0x28] sm:$0xff]  ;;  %v2792_v5 = vld [vmem:[%s4671_s0 + $0x18] sm:$0xff]  ;;  %v2735_v18 = vmov 2   ;;  %v4676_v27 = vmov 5   ;;  %v4680_v32 = vmov 3  }
   0x8   :  { %2573 = vset.pattern.permute.xlu0 %v2733_v0  ;;  %59 = vperm.xlu2 %2575, %v2769_v1   ;;  %v2797_v6 = vld [vmem:[%s4671_s0 + $0x8] sm:$0xff]  ;;  %v2805_v7 = vld [vmem:[%s4671_s0 + $0x40] sm:$0xff]  ;;  %v2810_v8 = vld [vmem:[%s4671_s0 + $0x38] sm:$0xff]  ;;  %v2911_v30 = vand.u32 127, %v44_v29  ;;  %v4678_v35 = vmov 4   ;;  %v4787_v36 = vmov 0 }
   0x9   :  { %53 = vperm.xlu1 %2574, %v2774_v2   ;;  %47 = vperm.xlu0 %2573, %v2779_v3   ;;  %4777 = vst [vmem:[#allocation8_spill] sm:$0xff] %v2805_v7  ;;  %v2815_v9 = vld [vmem:[%s4671_s0 + $0x30] sm:$0xff]  ;;  %v2823_v10 = vld [vmem:[%s4671_s0 + $0x58] sm:$0xff]  ;;  %v2833_v12 = vld [vmem:[%s4671_s0 + $0x48] sm:$0xff]  ;;  %v4684_v43 = vmov 6   ;;  %v4682_v44 = vmov 7  }
   0xa   :  { %v2828_v11 = vld [vmem:[%s4671_s0 + $0x50] sm:$0xff]  ;;  %v2846_v14 = vld [vmem:[%s4671_s0 + $0x68] sm:$0xff]  ;;  %v2851_v15 = vld [vmem:[%s4671_s0 + $0x60] sm:$0xff]  ;;  %v4793_v45 = vmov 0  ;;  %v4797_v49 = vmov 0  ;;  %v4802_v53 = vmov 0 }
   0xb   :  { %v2841_v13 = vld [vmem:[%s4671_s0 + $0x70] sm:$0xff]  ;;  %v2859_v16 = vld [vmem:[%s4671_s0 + $0x78] sm:$0xff]  ;;  %v4807_v57 = vmov 0  ;;  %v4674_v58 = vmov 8   ;;  %s2465_s11 = sshll.u32 %s4673_s2, 4  ;;  %s2466_s11 = int_to_ptr.hbm [resolvable:$true] %s2465_s11 }
  0x10   :  { %62 = vperm.xlu2 %2575, %v2787_v4  }
  0x11   :  { %56 = vperm.xlu1 %2574, %v2792_v5   ;;  %50 = vperm.xlu0 %2573, %v2797_v6  }
  0x18   :  { %71 = vperm.xlu2 %2575, %v2805_v7  }
  0x19   :  { %68 = vperm.xlu1 %2574, %v2810_v8   ;;  %65 = vperm.xlu0 %2573, %v2815_v9  }
  0x20   :  { %80 = vperm.xlu2 %2575, %v2823_v10  }
  0x21   :  { %77 = vperm.xlu1 %2574, %v2828_v11   ;;  %74 = vperm.xlu0 %2573, %v2833_v12  }
  0x28   :  { %89 = vperm.xlu2 %2575, %v2841_v13  }
  0x29   :  { %86 = vperm.xlu1 %2574, %v2846_v14   ;;  %83 = vperm.xlu0 %2573, %v2851_v15  }
  0x30   :  { %2577 = vset.pattern.permute.xlu2 %v2734_v17 }
  0x31   :  { %2576 = vset.pattern.permute.xlu1 %v2734_v17  ;;  %92 = vperm.xlu0 %2573, %v2859_v16  }
  0x32   :  { %114 = vperm.xlu2 %2577, %v2797_v6   ;;  %111 = vperm.xlu1 %2576, %v2779_v3  }
  0x39   :  { %2578 = vset.pattern.permute.xlu0 %v2734_v17 }
  0x3a   :  { %123 = vperm.xlu2 %2577, %v2769_v1   ;;  %120 = vperm.xlu1 %2576, %v2792_v5  }
  0x3b   :  { %117 = vperm.xlu0 %2578, %v2774_v2  }
  0x42   :  { %129 = vperm.xlu2 %2577, %v2815_v9   ;;  %126 = vperm.xlu1 %2576, %v2787_v4  }
  0x43   :  { %132 = vperm.xlu0 %2578, %v2810_v8  }
  0x4a   :  { %138 = vperm.xlu2 %2577, %v2833_v12   ;;  %135 = vperm.xlu1 %2576, %v2805_v7  }
  0x4b   :  { %141 = vperm.xlu0 %2578, %v2828_v11  }
  0x52   :  { %147 = vperm.xlu2 %2577, %v2851_v15   ;;  %144 = vperm.xlu1 %2576, %v2823_v10  }
  0x53   :  { %150 = vperm.xlu0 %2578, %v2846_v14  }
  0x5a   :  { %156 = vperm.xlu2 %2577, %v2859_v16   ;;  %153 = vperm.xlu1 %2576, %v2841_v13  }
  0x5b   :  { %2579 = vset.pattern.permute.xlu0 %v2735_v18 }
  0x5c   :  { %240 = vperm.xlu0 %2579, %v2779_v3  }
  0x62   :  { %2581 = vset.pattern.permute.xlu2 %v2735_v18  ;;  %2580 = vset.pattern.permute.xlu1 %v2735_v18  ;;  %v2879_v19 = vpop.permute.xlu2 %59 }
  0x63   :  { %4778 = vst [vmem:[#allocation9_spill] sm:$0xff] %v2879_v19  ;;  %246 = vperm.xlu2 %2581, %v2774_v2   ;;  %243 = vperm.xlu1 %2580, %v2797_v6  }
  0x64   :  { %255 = vperm.xlu0 %2579, %v2787_v4  }
  0x6a   :  { %v2884_v20 = vpop.permute.xlu2 %62 }
  0x6b   :  { %4779 = vst [vmem:[#allocation10_spill] sm:$0xff] %v2884_v20  ;;  %252 = vperm.xlu2 %2581, %v2769_v1   ;;  %249 = vperm.xlu1 %2580, %v2792_v5  }
  0x6c   :  { %264 = vperm.xlu0 %2579, %v2805_v7  }
  0x72   :  { %v2889_v21 = vpop.permute.xlu2 %71 }
  0x73   :  { %4780 = vst [vmem:[#allocation11_spill] sm:$0xff] %v2889_v21  ;;  %261 = vperm.xlu2 %2581, %v2810_v8   ;;  %258 = vperm.xlu1 %2580, %v2815_v9   ;;  %v824_v21 = vld [vmem:[#allocation2 + $0xc8] sm:$0xff] }
  0x74   :  { %273 = vperm.xlu0 %2579, %v2823_v10  }
  0x7a   :  { %v2894_v22 = vpop.permute.xlu2 %80 }
  0x7b   :  { %4781 = vst [vmem:[#allocation12_spill] sm:$0xff] %v2894_v22  ;;  %v2896_v23 = vpop.permute.xlu1 %53  ;;  %270 = vperm.xlu2 %2581, %v2828_v11   ;;  %267 = vperm.xlu1 %2580, %v2833_v12   ;;  %v2901_v24 = vpop.permute.xlu0 %47  ;;  %v825_v22 = vld [vmem:[#allocation2 + $0xd0] sm:$0xff] }
  0x7c   :  { %4782 = vst [vmem:[#allocation13_spill] sm:$0xff] %v2896_v23  ;;  %282 = vperm.xlu0 %2579, %v2841_v13   ;;  %v820_v23 = vld [vmem:[#allocation2 + $0xa8] sm:$0xff] }
  0x7d   :  { %4783 = vst [vmem:[#allocation14_spill] sm:$0xff] %v2901_v24  ;;  %v819_v24 = vld [vmem:[#allocation2 + $0xa0] sm:$0xff] }
  0x82   :  { %v2903_v25 = vpop.permute.xlu2 %89 }
  0x83   :  { %4784 = vst [vmem:[#allocation15_spill] sm:$0xff] %v2903_v25  ;;  %v2905_v26 = vpop.permute.xlu1 %56  ;;  %279 = vperm.xlu2 %2581, %v2846_v14   ;;  %276 = vperm.xlu1 %2580, %v2851_v15   ;;  %v51_v28 = vpop.permute.xlu0 %50 }
  0x84   :  { %4785 = vst [vmem:[#allocation16_spill] sm:$0xff] %v2905_v26  ;;  %2593 = vset.pattern.permute.xlu0 %v4676_v27  ;;  %vm95_vm0 = vcmp.eq.s32.totalorder %v51_v28, %v2911_v30 }
  0x85   :  { %470 = vperm.xlu0 %2593, %v2774_v2  }
  0x8b   :  { %v2914_v31 = vpop.permute.xlu1 %68  ;;  %2582 = vset.pattern.permute.xlu2 %v4680_v32  ;;  %285 = vperm.xlu1 %2580, %v2859_v16   ;;  %v66_v34 = vpop.permute.xlu0 %65 }
  0x8c   :  { %4786 = vst [vmem:[#allocation17_spill] sm:$0xff] %v2914_v31  ;;  %v115_v33 = vpop.permute.xlu2 %114  ;;  %304 = vperm.xlu2 %2582, %v2779_v3   ;;  %vm100_vm3 = vcmp.eq.s32.totalorder %v66_v34, %v2911_v30  ;;  %v830_v34 = vld [vmem:[#allocation2 + $0xf8] sm:$0xff]  ;;  %v3118_v31 = vand.u32 4294901760, %v824_v21 }
  0x8d   :  { %vm159_vm1 = vcmp.eq.s32.totalorder %v115_v33, %v2911_v30  ;;  %2598 = vset.pattern.permute.xlu0 %v4678_v35 }
  0x8e   :  { %vm2921_vm2 = vmor %vm95_vm0, %vm159_vm1  ;;  %393 = vperm.xlu0 %2598, %v2792_v5  }
  0x8f   :  { %v4788_v36 = vsel %vm2921_vm2, 4294967295, %v4787_v36 }
  0x90   :  { %4789 = vst [vmem:[#allocation18_spill] sm:$0xff] %v4788_v36  ;;  %v4830_v36 = vmov 5  }
  0x93   :  { %v2926_v37 = vpop.permute.xlu1 %77  ;;  %2583 = vset.pattern.permute.xlu1 %v4678_v35  ;;  %v75_v39 = vpop.permute.xlu0 %74 }
  0x94   :  { %4790 = vst [vmem:[#allocation19_spill] sm:$0xff] %v2926_v37  ;;  %v2929_v38 = vpop.permute.xlu2 %123  ;;  %2584 = vset.pattern.permute.xlu2 %v4676_v27  ;;  %384 = vperm.xlu1 %2583, %v2779_v3   ;;  %vm103_vm6 = vcmp.eq.s32.totalorder %v75_v39, %v2911_v30 }
  0x95   :  { %4791 = vst [vmem:[#allocation20_spill] sm:$0xff] %v2929_v38  ;;  %464 = vperm.xlu2 %2584, %v2779_v3  }
  0x96   :  { %408 = vperm.xlu0 %2598, %v2805_v7   ;;  %v815_v7 = vld [vmem:[#allocation2 + $0x80] sm:$0xff] }
  0x9b   :  { %v2936_v40 = vpop.permute.xlu1 %86  ;;  %v84_v42 = vpop.permute.xlu0 %83 }
  0x9c   :  { %4792 = vst [vmem:[#allocation21_spill] sm:$0xff] %v2936_v40  ;;  %v130_v41 = vpop.permute.xlu2 %129  ;;  %2585 = vset.pattern.permute.xlu1 %v4684_v43  ;;  %vm106_vm9 = vcmp.eq.s32.totalorder %v84_v42, %v2911_v30  ;;  %v3050_v42 = vand.u32 4294901760, %v830_v34  ;;  %v4822_v40 = vmov 6  }
  0x9d   :  { %vm164_vm4 = vcmp.eq.s32.totalorder %v130_v41, %v2911_v30  ;;  %2586 = vset.pattern.permute.xlu2 %v4682_v44  ;;  %544 = vperm.xlu1 %2585, %v2779_v3  }
  0x9e   :  { %vm2941_vm5 = vmor %vm100_vm3, %vm164_vm4  ;;  %2623 = vset.pattern.permute.xlu0 %v4680_v32  ;;  %624 = vperm.xlu2 %2586, %v2779_v3  }
  0x9f   :  { %v4794_v45 = vsel %vm2941_vm5, 4294967295, %v4793_v45  ;;  %307 = vperm.xlu0 %2623, %v2797_v6   ;;  %1283 = vmatpush.msra.mxu3 %v3050_v42 }
  0xa0   :  { %4795 = vst [vmem:[#allocation22_spill] sm:$0xff] %v4794_v45  ;;  %832 = vmatpush.msra.mxu0 %v3050_v42 }
  0xa3   :  { %v93_v47 = vpop.permute.xlu0 %92 }
  0xa4   :  { %v139_v46 = vpop.permute.xlu2 %138  ;;  %v2951_v48 = vpop.permute.xlu1 %111  ;;  %vm109_vm12 = vcmp.eq.s32.totalorder %v93_v47, %v2911_v30 }
  0xa5   :  { %vm167_vm7 = vcmp.eq.s32.totalorder %v139_v46, %v2911_v30  ;;  %4796 = vst [vmem:[#allocation23_spill] sm:$0xff] %v2951_v48  ;;  %2587 = vset.pattern.permute.xlu1 %v4678_v35 }
  0xa6   :  { %vm2953_vm8 = vmor %vm103_vm6, %vm167_vm7  ;;  %2588 = vset.pattern.permute.xlu2 %v4676_v27  ;;  %387 = vperm.xlu1 %2587, %v2797_v6  }
  0xa7   :  { %v4798_v49 = vsel %vm2953_vm8, 4294967295, %v4797_v49  ;;  %316 = vperm.xlu0 %2623, %v2769_v1   ;;  %467 = vperm.xlu2 %2588, %v2797_v6  }
  0xa8   :  { %4799 = vst [vmem:[#allocation24_spill] sm:$0xff] %v4798_v49  ;;  %v3115_v49 = vand.u32 4294901760, %v825_v22 }
  0xac   :  { %v148_v50 = vpop.permute.xlu2 %147  ;;  %v2964_v51 = vpop.permute.xlu1 %120 }
  0xad   :  { %vm170_vm10 = vcmp.eq.s32.totalorder %v148_v50, %v2911_v30  ;;  %4800 = vst [vmem:[#allocation25_spill] sm:$0xff] %v2964_v51  ;;  %v2966_v52 = vpop.permute.xlu0 %117  ;;  %v828_v50 = vld [vmem:[#allocation2 + $0xe8] sm:$0xff] }
  0xae   :  { %4801 = vst [vmem:[#allocation26_spill] sm:$0xff] %v2966_v52  ;;  %vm2968_vm11 = vmor %vm106_vm9, %vm170_vm10  ;;  %2589 = vset.pattern.permute.xlu1 %v4684_v43 }
  0xaf   :  { %v4803_v53 = vsel %vm2968_vm11, 4294967295, %v4802_v53  ;;  %331 = vperm.xlu0 %2623, %v2833_v12   ;;  %2590 = vset.pattern.permute.xlu2 %v4682_v44 }
  0xb0   :  { %4804 = vst [vmem:[#allocation27_spill] sm:$0xff] %v4803_v53  ;;  %547 = vperm.xlu1 %2589, %v2797_v6   ;;  %627 = vperm.xlu2 %2590, %v2797_v6  }
  0xb4   :  { %v157_v54 = vpop.permute.xlu2 %156  ;;  %v2979_v55 = vpop.permute.xlu1 %126 }
  0xb5   :  { %vm173_vm13 = vcmp.eq.s32.totalorder %v157_v54, %v2911_v30  ;;  %4805 = vst [vmem:[#allocation28_spill] sm:$0xff] %v2979_v55  ;;  %v2981_v56 = vpop.permute.xlu0 %132  ;;  %v4826_v55 = vmov 3  }
  0xb6   :  { %4806 = vst [vmem:[#allocation29_spill] sm:$0xff] %v2981_v56  ;;  %vm2983_vm14 = vmor %vm109_vm12, %vm173_vm13 }
  0xb7   :  { %v4808_v57 = vsel %vm2983_vm14, 4294967295, %v4807_v57  ;;  %2628 = vset.pattern.permute.xlu0 %v4674_v58 }
  0xb8   :  { %4809 = vst [vmem:[#allocation30_spill] sm:$0xff] %v4808_v57  ;;  %2591 = vset.pattern.permute.xlu1 %v4680_v32  ;;  %704 = vperm.xlu0 %2628, %v2779_v3  }
  0xb9   :  { %2592 = vset.pattern.permute.xlu2 %v4678_v35  ;;  %310 = vperm.xlu1 %2591, %v2774_v2  }
  0xba   :  { %390 = vperm.xlu2 %2592, %v2774_v2  }
  0xbc   :  { %v2993_v59 = vpop.permute.xlu1 %135 }
  0xbd   :  { %4810 = vst [vmem:[#allocation31_spill] sm:$0xff] %v2993_v59  ;;  %v2995_v60 = vpop.permute.xlu0 %141  ;;  %v2997_v61 = vpop.permute.xlu2 %246 }
  0xbe   :  { %4811 = vst [vmem:[#allocation32_spill] sm:$0xff] %v2995_v60 }
  0xc0   :  { %707 = vperm.xlu0 %2628, %v2797_v6  }
  0xc1   :  { %2594 = vset.pattern.permute.xlu1 %v4684_v43 }
  0xc2   :  { %2595 = vset.pattern.permute.xlu2 %v4682_v44  ;;  %550 = vperm.xlu1 %2594, %v2774_v2  }
  0xc3   :  { %630 = vperm.xlu2 %2595, %v2774_v2  }
  0xc4   :  { %v3004_v62 = vpop.permute.xlu1 %144 }
  0xc5   :  { %4812 = vst [vmem:[#allocation33_spill] sm:$0xff] %v3004_v62  ;;  %v3006_v63 = vpop.permute.xlu0 %150  ;;  %v3008_v0 = vpop.permute.xlu2 %252 }
  0xc6   :  { %4813 = vst [vmem:[#allocation34_spill] sm:$0xff] %v3006_v63 }
  0xc8   :  { %716 = vperm.xlu0 %2628, %v2769_v1  }
  0xca   :  { %2596 = vset.pattern.permute.xlu1 %v4674_v58 }
  0xcb   :  { %2597 = vset.pattern.permute.xlu2 %v4680_v32  ;;  %710 = vperm.xlu1 %2596, %v2774_v2  }
  0xcc   :  { %313 = vperm.xlu2 %2597, %v2792_v5   ;;  %v3015_v3 = vpop.permute.xlu1 %153 }
  0xcd   :  { %4814 = vst [vmem:[#allocation35_spill] sm:$0xff] %v3015_v3  ;;  %v3017_v6 = vpop.permute.xlu2 %261 }
  0xce   :  { %4815 = vst [vmem:[#allocation36_spill] sm:$0xff] %v3017_v6  ;;  %v3019_v17 = vpop.permute.xlu0 %240 }
  0xd0   :  { %731 = vperm.xlu0 %2628, %v2833_v12  }
  0xd3   :  { %2599 = vset.pattern.permute.xlu1 %v4676_v27 }
  0xd4   :  { %2600 = vset.pattern.permute.xlu2 %v4684_v43  ;;  %473 = vperm.xlu1 %2599, %v2792_v5  }
  0xd5   :  { %553 = vperm.xlu2 %2600, %v2792_v5   ;;  %v3026_v18 = vpop.permute.xlu2 %270  ;;  %v3028_v2 = vpop.permute.xlu1 %243 }
  0xd6   :  { %4816 = vst [vmem:[#allocation37_spill] sm:$0xff] %v3026_v18  ;;  %v3030_v28 = vpop.permute.xlu0 %255 }
  0xd7   :  { %4817 = vst [vmem:[#allocation38_spill] sm:$0xff] %v3030_v28 }
  0xd8   :  { %2633 = vset.pattern.permute.xlu0 %v4682_v44 }
  0xd9   :  { %639 = vperm.xlu0 %2633, %v2787_v4  }
  0xdc   :  { %2601 = vset.pattern.permute.xlu1 %v4682_v44 }
  0xdd   :  { %2602 = vset.pattern.permute.xlu2 %v4674_v58  ;;  %633 = vperm.xlu1 %2601, %v2792_v5   ;;  %v3037_v12 = vpop.permute.xlu2 %279  ;;  %v3039_v29 = vpop.permute.xlu1 %249 }
  0xde   :  { %4818 = vst [vmem:[#allocation39_spill] sm:$0xff] %v3037_v12  ;;  %713 = vperm.xlu2 %2602, %v2792_v5   ;;  %v3042_v33 = vpop.permute.xlu0 %264  ;;  %v829_v5 = vld [vmem:[#allocation2 + $0xf0] sm:$0xff]  ;;  %v818_v12 = vld [vmem:[#allocation2 + $0x98] sm:$0xff] }
  0xdf   :  { %4819 = vst [vmem:[#allocation40_spill] sm:$0xff] %v3042_v33  ;;  %v3060_v47 = vand.u32 4294901760, %v829_v5  ;;  %v816_v33 = vld [vmem:[#allocation2 + $0x88] sm:$0xff] }
  0xe0   :  { %v3235_v28 = vand.u32 4294901760, %v816_v33 }
  0xe1   :  { %654 = vperm.xlu0 %2633, %v2828_v11   ;;  %v3058_v11 = vsub.f32 %v830_v34, %v3050_v42  ;;  %v3067_v58 = vsub.f32 %v829_v5, %v3060_v47  ;;  %v827_v34 = vld [vmem:[#allocation2 + $0xe0] sm:$0xff]  ;;  %1285 = vmatpush.msra.mxu3 %v3060_v47 }
  0xe2   :  { %v3082_v5 = vand.u32 4294901760, %v827_v34  ;;  %834 = vmatpush.msra.mxu0 %v3060_v47 }
  0xe3   :  { %v4688_v54 = vand.u32 4294901760, %v3058_v11  ;;  %1155 = vmatpush.msra.mxu2 %v3058_v11  ;;  %v4691_v32 = vand.u32 4294901760, %v3067_v58 }
  0xe5   :  { %2603 = vset.pattern.permute.xlu1 %v4678_v35  ;;  %v3046_v39 = vpop.permute.xlu1 %258  ;;  %v995_v35 = vsub.f32 %v3058_v11, %v4688_v54  ;;  %1158 = vmatpush.msra.mxu2 %v3067_v58  ;;  %v1001_v54 = vsub.f32 %v3067_v58, %v4691_v32  ;;  %v4824_v32 = vmov 7  }
  0xe6   :  { %4820 = vst [vmem:[#allocation41_spill] sm:$0xff] %v3046_v39  ;;  %v3048_v41 = vpop.permute.xlu2 %304  ;;  %2604 = vset.pattern.permute.xlu2 %v4676_v27  ;;  %396 = vperm.xlu1 %2603, %v2769_v1   ;;  %v3054_v46 = vpop.permute.xlu0 %273  ;;  %v3070_v27 = vand.u32 4294901760, %v828_v50 }
  0xe7   :  { %4821 = vst [vmem:[#allocation42_spill] sm:$0xff] %v3054_v46  ;;  %476 = vperm.xlu2 %2604, %v2769_v1   ;;  %v996_v25 = vand.u32 4294901760, %v995_v35 }
  0xe8   :  { %v3079_v44 = vsub.f32 %v828_v50, %v3070_v27  ;;  %1287 = vmatpush.msra.mxu3 %v3070_v27  ;;  %v3093_v50 = vsub.f32 %v827_v34, %v3082_v5  ;;  %836 = vmatpush.msra.mxu0 %v3070_v27  ;;  %v1002_v34 = vand.u32 4294901760, %v1001_v54  ;;  %v823_v54 = vld [vmem:[#allocation2 + $0xc0] sm:$0xff] }
  0xe9   :  { %2638 = vset.pattern.permute.xlu0 %v4684_v43  ;;  %v826_v43 = vld [vmem:[#allocation2 + $0xd8] sm:$0xff]  ;;  %997 = vmatpush.msra.mxu1 %v996_v25 }
  0xea   :  { %562 = vperm.xlu0 %2638, %v2815_v9   ;;  %v4694_v3 = vand.u32 4294901760, %v3079_v44  ;;  %1161 = vmatpush.msra.mxu2 %v3079_v44  ;;  %v3102_v35 = vand.u32 4294901760, %v826_v43  ;;  %v4695_v37 = vand.u32 4294901760, %v3093_v50 }
  0xeb   :  { %1289 = vmatpush.msra.mxu3 %v3082_v5  ;;  %1003 = vmatpush.msra.mxu1 %v1002_v34 }
  0xec   :  { %v1007_v62 = vsub.f32 %v3079_v44, %v4694_v3  ;;  %v3113_v60 = vsub.f32 %v826_v43, %v3102_v35  ;;  %1164 = vmatpush.msra.mxu2 %v3093_v50  ;;  %v3127_v43 = vsub.f32 %v825_v22, %v3115_v49  ;;  %838 = vmatpush.msra.mxu0 %v3082_v5  ;;  %v3134_v3 = vand.u32 4294901760, %v823_v54  ;;  %v822_v22 = vld [vmem:[#allocation2 + $0xb8] sm:$0xff] }
  0xed   :  { %v3086_v57 = vpop.permute.xlu1 %267  ;;  %1291 = vmatpush.msra.mxu3 %v3102_v35 }
  0xee   :  { %2605 = vset.pattern.permute.xlu1 %v4822_v40  ;;  %v3098_v63 = vpop.permute.xlu0 %282  ;;  %v1008_v59 = vand.u32 4294901760, %v1007_v62  ;;  %v4698_v25 = vand.u32 4294901760, %v3113_v60  ;;  %1167 = vmatpush.msra.mxu2 %v3113_v60  ;;  %v3131_v62 = vsub.f32 %v824_v21, %v3118_v31  ;;  %v3146_v45 = vsub.f32 %v823_v54, %v3134_v3  ;;  %v821_v21 = vld [vmem:[#allocation2 + $0xb0] sm:$0xff] }
  0xef   :  { %4823 = vst [vmem:[#allocation43_spill] sm:$0xff] %v3098_v63  ;;  %v3100_v53 = vpop.permute.xlu2 %464  ;;  %2606 = vset.pattern.permute.xlu2 %v4824_v32  ;;  %556 = vperm.xlu1 %2605, %v2769_v1   ;;  %v3170_v51 = vand.u32 4294901760, %v821_v21 }
  0xf0   :  { %636 = vperm.xlu2 %2606, %v2769_v1   ;;  %v1013_v1 = vsub.f32 %v3093_v50, %v4695_v37  ;;  %1009 = vmatpush.msra.mxu1 %v1008_v59  ;;  %v1019_v34 = vsub.f32 %v3113_v60, %v4698_v25  ;;  %v4699_v37 = vand.u32 4294901760, %v3127_v43  ;;  %v3149_v59 = vand.u32 4294901760, %v822_v22 }
  0xf1   :  { %1293 = vmatpush.msra.mxu3 %v3115_v49  ;;  %1170 = vmatpush.msra.mxu2 %v3127_v43  ;;  %v4827_v54 = vand.u32 4294901760, %v3131_v62  ;;  %v4702_v38 = vand.u32 4294901760, %v3146_v45  ;;  %v3180_v48 = vsub.f32 %v821_v21, %v3170_v51 }
  0xf2   :  { %577 = vperm.xlu0 %2638, %v2823_v10   ;;  %v1014_v10 = vand.u32 4294901760, %v1013_v1  ;;  %840 = vmatpush.msra.mxu0 %v3102_v35  ;;  %v1020_v25 = vand.u32 4294901760, %v1019_v34  ;;  %v1025_v20 = vsub.f32 %v3127_v43, %v4699_v37  ;;  %v4829_v34 = vmov 4  }
  0xf3   :  { %1295 = vmatpush.msra.mxu3 %v3118_v31  ;;  %v1031_v19 = vsub.f32 %v3131_v62, %v4827_v54  ;;  %1173 = vmatpush.msra.mxu2 %v3131_v62  ;;  %v1037_v52 = vsub.f32 %v3146_v45, %v4702_v38  ;;  %4831 = vst [vmem:[#allocation46_spill] sm:$0xff] %v3180_v48  ;;  %v3188_v38 = vand.u32 4294901760, %v819_v24  ;;  %v4704_v63 = vand.u32 4294901760, %v3180_v48 }
  0xf4   :  { %1015 = vmatpush.msra.mxu1 %v1014_v10  ;;  %v3164_v10 = vsub.f32 %v822_v22, %v3149_v59  ;;  %v1026_v26 = vand.u32 4294901760, %v1025_v20  ;;  %v3182_v20 = vand.u32 4294901760, %v820_v23  ;;  %842 = vmatpush.msra.mxu0 %v3115_v49 }
  0xf5   :  { %v3141_v56 = vpop.permute.xlu1 %276  ;;  %v1032_v54 = vand.u32 4294901760, %v1031_v19  ;;  %1176 = vmatpush.msra.mxu2 %v3146_v45  ;;  %v1038_v19 = vand.u32 4294901760, %v1037_v52  ;;  %1297 = vmatpush.msra.mxu3 %v3134_v3  ;;  %v3202_v52 = vand.u32 4294901760, %v818_v12  ;;  %v1049_v46 = vsub.f32 %v3180_v48, %v4704_v63 }
  0xf6   :  { %4825 = vst [vmem:[#allocation44_spill] sm:$0xff] %v3141_v56  ;;  %1021 = vmatpush.msra.mxu1 %v1020_v25  ;;  %v4703_v22 = vand.u32 4294901760, %v3164_v10  ;;  %v3194_v21 = vsub.f32 %v820_v23, %v3182_v20  ;;  %844 = vmatpush.msra.mxu0 %v3118_v31 }
  0xf7   :  { %v3151_v1 = vpop.permute.xlu0 %470  ;;  %2607 = vset.pattern.permute.xlu1 %v4826_v55  ;;  %4828 = vst [vmem:[#allocation45_spill] sm:$0xff] %v3164_v10  ;;  %1179 = vmatpush.msra.mxu2 %v3164_v10  ;;  %v1050_v63 = vand.u32 4294901760, %v1049_v46 }
  0xf8   :  { %2608 = vset.pattern.permute.xlu2 %v4829_v34  ;;  %319 = vperm.xlu1 %2607, %v2787_v4   ;;  %v3168_v37 = vpop.permute.xlu2 %624  ;;  %v1043_v25 = vsub.f32 %v3164_v10, %v4703_v22  ;;  %v4705_v23 = vand.u32 4294901760, %v3194_v21 }
  0xf9   :  { %399 = vperm.xlu2 %2608, %v2787_v4   ;;  %1027 = vmatpush.msra.mxu1 %v1026_v26  ;;  %v3200_v26 = vsub.f32 %v819_v24, %v3188_v38 }
  0xfa   :  { %2643 = vset.pattern.permute.xlu0 %v4830_v36  ;;  %v1044_v22 = vand.u32 4294901760, %v1043_v25  ;;  %1182 = vmatpush.msra.mxu2 %v3180_v48  ;;  %v3215_v25 = vsub.f32 %v818_v12, %v3202_v52  ;;  %v1055_v6 = vsub.f32 %v3194_v21, %v4705_v23 }
  0xfb   :  { %485 = vperm.xlu0 %2643, %v2810_v8   ;;  %1033 = vmatpush.msra.mxu1 %v1032_v54  ;;  %4833 = vst [vmem:[#allocation48_spill] sm:$0xff] %v3200_v26  ;;  %v4708_v24 = vand.u32 4294901760, %v3200_v26 }
  0xfc   :  { %1299 = vmatpush.msra.mxu3 %v3149_v59  ;;  %846 = vmatpush.msra.mxu0 %v3134_v3  ;;  %v1056_v23 = vand.u32 4294901760, %v1055_v6 }
  0xfd   :  { %v3196_v56 = vpop.permute.xlu1 %285  ;;  %1039 = vmatpush.msra.mxu1 %v1038_v19  ;;  %v1061_v12 = vsub.f32 %v3200_v26, %v4708_v24  ;;  %1185 = vmatpush.msra.mxu2 %v3194_v21  ;;  %v3242_v24 = vsub.f32 %v816_v33, %v3235_v28 }
  0xfe   :  { %4832 = vst [vmem:[#allocation47_spill] sm:$0xff] %v3196_v56  ;;  %v817_v56 = vld [vmem:[#allocation2 + $0x90] sm:$0xff]  ;;  %1301 = vmatpush.msra.mxu3 %v3170_v51  ;;  %848 = vmatpush.msra.mxu0 %v3149_v59 }
  0xff   :  { %v3217_v18 = vand.u32 4294901760, %v817_v56  ;;  %1045 = vmatpush.msra.mxu1 %v1044_v22  ;;  %v1062_v39 = vand.u32 4294901760, %v1061_v12  ;;  %v3248_v22 = vand.u32 4294901760, %v815_v7  ;;  %1188 = vmatpush.msra.mxu2 %v3200_v26 }
 0x100   :  { %v3210_v54 = vpop.permute.xlu0 %393  ;;  %2609 = vset.pattern.permute.xlu1 %v4830_v36  ;;  %1303 = vmatpush.msra.mxu3 %v3182_v20 }
 0x101   :  { %2610 = vset.pattern.permute.xlu2 %v4822_v40  ;;  %479 = vperm.xlu1 %2609, %v2787_v4   ;;  %v3226_v19 = vpop.permute.xlu2 %467  ;;  %v3233_v46 = vsub.f32 %v817_v56, %v3217_v18  ;;  %v4834_v56 = vand.u32 4294901760, %v3215_v25  ;;  %v3260_v33 = vsub.f32 %v815_v7, %v3248_v22 }
 0x102   :  { %559 = vperm.xlu2 %2610, %v2787_v4   ;;  %1051 = vmatpush.msra.mxu1 %v1050_v63 }
 0x103   :  { %500 = vperm.xlu0 %2643, %v2851_v15   ;;  %v4711_v48 = vand.u32 4294901760, %v3233_v46  ;;  %v1067_v10 = vsub.f32 %v3215_v25, %v4834_v56  ;;  %v4712_v15 = vand.u32 4294901760, %v3242_v24  ;;  %850 = vmatpush.msra.mxu0 %v3170_v51  ;;  %v4713_v26 = vand.u32 4294901760, %v3260_v33 }
 0x104   :  { %1057 = vmatpush.msra.mxu1 %v1056_v23  ;;  %1191 = vmatpush.msra.mxu2 %v3215_v25 }
 0x105   :  { %v1073_v63 = vsub.f32 %v3233_v46, %v4711_v48  ;;  %v1068_v56 = vand.u32 4294901760, %v1067_v10  ;;  %1305 = vmatpush.msra.mxu3 %v3188_v38  ;;  %v1079_v23 = vsub.f32 %v3242_v24, %v4712_v15  ;;  %v4835_v48 = vmov 8   ;;  %852 = vmatpush.msra.mxu0 %v3182_v20 }
 0x106   :  { %v3253_v6 = vpop.permute.xlu1 %384  ;;  %1063 = vmatpush.msra.mxu1 %v1062_v39  ;;  %v1085_v10 = vsub.f32 %v3260_v33, %v4713_v26  ;;  %1194 = vmatpush.msra.mxu2 %v3233_v46 }
 0x107   :  { %v1074_v39 = vand.u32 4294901760, %v1073_v63  ;;  %v1080_v15 = vand.u32 4294901760, %v1079_v23  ;;  %1307 = vmatpush.msra.mxu3 %v3202_v52  ;;  %854 = vmatpush.msra.mxu0 %v3188_v38 }
 0x108   :  { %v3262_v12 = vpop.permute.xlu0 %408  ;;  %1069 = vmatpush.msra.mxu1 %v1068_v56  ;;  %1197 = vmatpush.msra.mxu2 %v3242_v24 }
 0x109   :  { %2611 = vset.pattern.permute.xlu1 %v4835_v48  ;;  %1309 = vmatpush.msra.mxu3 %v3217_v18 }
 0x10a   :  { %2612 = vset.pattern.permute.xlu2 %v4826_v55  ;;  %719 = vperm.xlu1 %2611, %v2787_v4   ;;  %v3275_v7 = vpop.permute.xlu2 %627  ;;  %v1086_v4 = vand.u32 4294901760, %v1085_v10 }
 0x10b   :  { %322 = vperm.xlu2 %2612, %v2815_v9   ;;  %2652 = vset.pattern.permute.xlu0 %v4829_v34 }
 0x10c   :  { %423 = vperm.xlu0 %2652, %v2846_v14   ;;  %1075 = vmatpush.msra.mxu1 %v1074_v39  ;;  %v4836_v39 = vand.u32 4294901760, %v3058_v11 }
 0x10d   :  { %856 = vmatpush.msra.mxu0 %v3202_v52  ;;  %1200 = vmatpush.msra.mxu2 %v3260_v33 }
 0x10e   :  { %1081 = vmatpush.msra.mxu1 %v1080_v15  ;;  %1311 = vmatpush.msra.mxu3 %v3235_v28  ;;  %v3304_v15 = vadd.s32 128, %v2911_v30 }
 0x10f   :  { %v545_v63 = vpop.permute.xlu1 %544  ;;  %858 = vmatpush.msra.mxu0 %v3217_v18 }
 0x110   :  { %1087 = vmatpush.msra.mxu1 %v1086_v4  ;;  %1313 = vmatpush.msra.mxu3 %v3248_v22  ;;  %vm291_vm15 = vcmp.eq.s32.totalorder %v3008_v0, %v3304_v15  ;;  %vm287_vm1 = vcmp.eq.s32.totalorder %v3019_v17, %v3304_v15  ;;  %vm351_vm3 = vcmp.eq.s32.totalorder %v3048_v41, %v3304_v15  ;;  %v4840_v17 = vand.u32 4294901760, %v3079_v44  ;;  %v2677_v44 = vld [vmem:[%s4671_s0 + $0x78] sm:$0xff] }
 0x111   :  { %v308_v26 = vpop.permute.xlu0 %307  ;;  %860 = vmatpush.msra.mxu0 %v3235_v28  ;;  %vm367_vm6 = vmor %vm287_vm1, %vm351_vm3  ;;  %vm431_vm7 = vcmp.eq.s32.totalorder %v3253_v6, %v3304_v15  ;;  %vm511_vm9 = vcmp.eq.s32.totalorder %v3100_v53, %v3304_v15  ;;  %vm296_vm12 = vcmp.eq.s32.totalorder %v3086_v57, %v3304_v15  ;;  %vm591_vm13 = vcmp.eq.s32.totalorder %v545_v63, %v3304_v15  ;;  %v4861_v6 = vld [vmem:[#allocation48_spill] sm:$0xff] }
 0x112   :  { %2613 = vset.pattern.permute.xlu1 %v4829_v34  ;;  %1541 = vmatpush.msrb.mxu1 %v3050_v42  ;;  %vm447_vm10 = vmor %vm367_vm6, %vm431_vm7  ;;  %v4844_v53 = vand.u32 4294901760, %v3113_v60  ;;  %vm288_vm7 = vcmp.eq.s32.totalorder %v3028_v2, %v3304_v15  ;;  %v4847_v60 = vand.u32 4294901760, %v3127_v43  ;;  %v4853_v41 = vand.u32 4294901760, %v3146_v45  ;;  %v4854_v45 = vld [vmem:[#allocation45_spill] sm:$0xff]  ;;  %v4858_v43 = vld [vmem:[#allocation46_spill] sm:$0xff] }
 0x113   :  { %2614 = vset.pattern.permute.xlu2 %v4830_v36  ;;  %402 = vperm.xlu1 %2613, %v2815_v9   ;;  %vm527_vm3 = vmor %vm447_vm10, %vm511_vm9  ;;  %vm434_vm9 = vcmp.eq.s32.totalorder %v3210_v54, %v3304_v15  ;;  %v2672_v42 = vld [vmem:[%s4671_s0 + $0x50] sm:$0xff] }
 0x114   :  { %482 = vperm.xlu2 %2614, %v2815_v9   ;;  %2657 = vset.pattern.permute.xlu0 %v4826_v55  ;;  %v3296_v14 = vpop.permute.xlu2 %390  ;;  %vm3358_vm14 = vmor %vm527_vm3, %vm591_vm13  ;;  %vm671_vm13 = vcmp.eq.s32.totalorder %v3168_v37, %v3304_v15  ;;  %v4850_v37 = vand.u32 4294901760, %v3131_v62  ;;  %v4859_v62 = vand.u32 4294901760, %v4858_v43  ;;  %v4868_v43 = vld [vmem:[#allocation38_spill] sm:$0xff] }
 0x115   :  { %346 = vperm.xlu0 %2657, %v2841_v13   ;;  %1543 = vmatpush.msrb.mxu1 %v3060_v47  ;;  %v4855_v47 = vand.u32 4294901760, %v4854_v45 }
 0x116   :  { %862 = vmatpush.msra.mxu0 %v3248_v22 }
 0x117   :  { %1545 = vmatpush.msrb.mxu1 %v3070_v27  ;;  %v4839_v27 = vand.u32 4294901760, %v3067_v58  ;;  %v4841_v58 = vand.u32 4294901760, %v3093_v50 }
 0x118   :  { %v388_v56 = vpop.permute.xlu1 %387  ;;  %1414 = vmatpush.msrb.mxu0 %v4836_v39 }
 0x119   :  { %v317_v23 = vpop.permute.xlu0 %316  ;;  %1547 = vmatpush.msrb.mxu1 %v3082_v5  ;;  %vm432_vm6 = vcmp.eq.s32.totalorder %v388_v56, %v3304_v15 }
 0x11a   :  { %vm355_vm0 = vcmp.eq.s32.totalorder %v317_v23, %v3304_v15  ;;  %1418 = vmatpush.msrb.mxu0 %v4839_v27 }
 0x11b   :  { %vm3318_vm4 = vmor %vm291_vm15, %vm355_vm0  ;;  %2615 = vset.pattern.permute.xlu1 %v4824_v32  ;;  %1549 = vmatpush.msrb.mxu1 %v3102_v35  ;;  %vm352_vm0 = vcmp.eq.s32.totalorder %v308_v26, %v3304_v15  ;;  %v4860_v26 = vand.u32 4294901760, %v3194_v21 }
 0x11c   :  { %2616 = vset.pattern.permute.xlu2 %v4835_v48  ;;  %642 = vperm.xlu1 %2615, %v2815_v9   ;;  %vm368_vm10 = vmor %vm288_vm7, %vm352_vm0  ;;  %vm512_vm0 = vcmp.eq.s32.totalorder %v3226_v19, %v3304_v15 }
 0x11d   :  { %722 = vperm.xlu2 %2616, %v2815_v9   ;;  %v3326_v0 = vpop.permute.xlu2 %630  ;;  %2662 = vset.pattern.permute.xlu0 %v4835_v48 }
 0x11e   :  { %746 = vperm.xlu0 %2662, %v2841_v13   ;;  %1422 = vmatpush.msrb.mxu0 %v4840_v17  ;;  %v2671_v17 = vld [vmem:[%s4671_s0 + $0x48] sm:$0xff] }
 0x11f   :  { %1551 = vmatpush.msrb.mxu1 %v3115_v49 }
 0x120   :  { %1426 = vmatpush.msrb.mxu0 %v4841_v58 }
 0x121   :  { %v332_v9 = vpop.permute.xlu0 %331  ;;  %1553 = vmatpush.msrb.mxu1 %v3118_v31 }
 0x122   :  { %vm360_vm15 = vcmp.eq.s32.totalorder %v332_v9, %v3304_v15  ;;  %v548_v13 = vpop.permute.xlu1 %547  ;;  %1430 = vmatpush.msrb.mxu0 %v4844_v53 }
 0x123   :  { %vm3347_vm1 = vmor %vm296_vm12, %vm360_vm15  ;;  %vm290_vm12 = vcmp.eq.s32.totalorder %v3039_v29, %v3304_v15  ;;  %1555 = vmatpush.msrb.mxu1 %v3134_v3  ;;  %v4737_v3 = vmov 0.0  }
 0x124   :  { %2617 = vset.pattern.permute.xlu1 %v4826_v55  ;;  %vm448_vm15 = vmor %vm368_vm10, %vm432_vm6  ;;  %1434 = vmatpush.msrb.mxu0 %v4847_v60  ;;  %vm433_vm10 = vcmp.eq.s32.totalorder %v3296_v14, %v3304_v15 }
 0x125   :  { %2618 = vset.pattern.permute.xlu2 %v4829_v34  ;;  %325 = vperm.xlu1 %2617, %v2810_v8   ;;  %vm687_vm6 = vmor %vm3358_vm14, %vm671_vm13  ;;  %vm513_vm14 = vcmp.eq.s32.totalorder %v3151_v1, %v3304_v15 }
 0x126   :  { %405 = vperm.xlu2 %2618, %v2810_v8   ;;  %v314_v49 = vpop.permute.xlu2 %313  ;;  %2667 = vset.pattern.permute.xlu0 %v4824_v32  ;;  %vm3390_vm8 = vmor %vm448_vm15, %vm512_vm0  ;;  %vm592_vm15 = vcmp.eq.s32.totalorder %v548_v13, %v3304_v15 }
 0x127   :  { %vm354_vm3 = vcmp.eq.s32.totalorder %v314_v49, %v3304_v15  ;;  %669 = vperm.xlu0 %2667, %v2859_v16   ;;  %1438 = vmatpush.msrb.mxu0 %v4850_v37 }
 0x128   :  { %vm370_vm7 = vmor %vm290_vm12, %vm354_vm3  ;;  %vm289_vm12 = vcmp.eq.s32.totalorder %v2997_v61, %v3304_v15  ;;  %1557 = vmatpush.msrb.mxu1 %v3149_v59 }
 0x129   :  { %vm3379_vm11 = vmor %vm370_vm7, %vm434_vm9  ;;  %1442 = vmatpush.msrb.mxu0 %v4853_v41 }
 0x12a   :  { %v705_v16 = vpop.permute.xlu0 %704  ;;  %1559 = vmatpush.msrb.mxu1 %v3170_v51 }
 0x12b   :  { %vm751_vm9 = vcmp.eq.s32.totalorder %v705_v16, %v3304_v15  ;;  %v311_v31 = vpop.permute.xlu1 %310  ;;  %1446 = vmatpush.msrb.mxu0 %v4855_v47 }
 0x12c   :  { %vm767_vm13 = vmor %vm687_vm6, %vm751_vm9  ;;  %vm353_vm3 = vcmp.eq.s32.totalorder %v311_v31, %v3304_v15  ;;  %1561 = vmatpush.msrb.mxu1 %v3182_v20  ;;  %v4863_v20 = vld [vmem:[#allocation8_spill] sm:$0xff] }
 0x12d   :  { %v3405_v11 = vsel %vm767_vm13, 1.0, %v4737_v3  ;;  %vm369_vm0 = vmor %vm289_vm12, %vm353_vm3  ;;  %2619 = vset.pattern.permute.xlu1 %v4822_v40  ;;  %1450 = vmatpush.msrb.mxu0 %v4859_v62  ;;  %vm673_vm3 = vcmp.eq.s32.totalorder %v3326_v0, %v3304_v15 }
 0x12e   :  { %vm449_vm7 = vmor %vm369_vm0, %vm433_vm10  ;;  %2620 = vset.pattern.permute.xlu2 %v4824_v32  ;;  %565 = vperm.xlu1 %2619, %v2810_v8   ;;  %v864_v61 = vsub.f32 %v3405_v11, %v3405_v11  ;;  %vm672_vm10 = vcmp.eq.s32.totalorder %v3275_v7, %v3304_v15  ;;  %v4862_v7 = vand.u32 4294901760, %v4861_v6 }
 0x12f   :  { %1089 = vmatmul.f32.vlgmr.msra.gmra.mxu1 %v3405_v11  ;;  %645 = vperm.xlu2 %2620, %v2810_v8   ;;  %vm3422_vm6 = vmor %vm449_vm7, %vm513_vm14  ;;  %v3426_v50 = vpop.permute.xlu2 %553 }
 0x130   :  { %vm608_vm9 = vmor %vm3390_vm8, %vm592_vm15  ;;  %1203 = vmatmul.f32.vlgmr.msra.gmra.mxu2 %v864_v61  ;;  %v865_v35 = vand.u32 4294901760, %v864_v61  ;;  %2669 = vset.pattern.permute.xlu0 %v4835_v48 }
 0x131   :  { %1454 = vmatpush.msrb.mxu0 %v4860_v26  ;;  %vm688_vm12 = vmor %vm608_vm9, %vm672_vm10  ;;  %1563 = vmatpush.msrb.mxu1 %v3188_v38  ;;  %v4864_v38 = vand.u32 4294901760, %v3215_v25  ;;  %v4866_v25 = vand.u32 4294901760, %v3242_v24  ;;  %vm594_vm9 = vcmp.eq.s32.totalorder %v3426_v50, %v3304_v15  ;;  %v2673_v26 = vld [vmem:[%s4671_s0 + $0x58] sm:$0xff] }
 0x132   :  { %1317 = vmatmul.f32.vlgmr.msra.gmra.mxu3 %v865_v35  ;;  %v708_v59 = vpop.permute.xlu0 %707  ;;  %v866_v1 = vsub.f32 %v864_v61, %v865_v35 }
 0x133   :  { %vm752_vm14 = vcmp.eq.s32.totalorder %v708_v59, %v3304_v15  ;;  %1458 = vmatpush.msrb.mxu0 %v4862_v7  ;;  %1565 = vmatpush.msrb.mxu1 %v3202_v52  ;;  %v4867_v52 = vand.u32 4294901760, %v3260_v33 }
 0x134   :  { %vm768_vm8 = vmor %vm688_vm12, %vm752_vm14  ;;  %v551_v54 = vpop.permute.xlu1 %550  ;;  %v867_v19 = vand.u32 4294901760, %v866_v1 }
 0x135   :  { %v3445_v51 = vsel %vm768_vm8, 1.0, %v4737_v3  ;;  %vm593_vm13 = vcmp.eq.s32.totalorder %v551_v54, %v3304_v15  ;;  %1462 = vmatpush.msrb.mxu0 %v4864_v38  ;;  %1567 = vmatpush.msrb.mxu1 %v3217_v18  ;;  %v2670_v18 = vld [vmem:[%s4671_s0 + $0x40] sm:$0xff] }
 0x136   :  { %2621 = vset.pattern.permute.xlu1 %v4835_v48  ;;  %868 = vmatmul.f32.vlgmr.msra.gmra.mxu0 %v867_v19  ;;  %v872_v21 = vsub.f32 %v3445_v51, %v3445_v51  ;;  %vm609_vm15 = vmor %vm3422_vm6, %vm593_vm13 }
 0x137   :  { %1093 = vmatmul.f32.gmra.mxu1 %v3445_v51  ;;  %2622 = vset.pattern.permute.xlu2 %v4826_v55  ;;  %vm689_vm0 = vmor %vm609_vm15, %vm673_vm3 }
 0x138   :  { %725 = vperm.xlu1 %2621, %v2810_v8   ;;  %328 = vperm.xlu2 %2622, %v4863_v20   ;;  %v873_v10 = vand.u32 4294901760, %v872_v21  ;;  %v714_v4 = vpop.permute.xlu2 %713  ;;  %v4865_v8 = vand.u32 4294901760, %v3233_v46 }
 0x139   :  { %1208 = vmatmul.f32.gmra.mxu2 %v872_v21  ;;  %1569 = vmatpush.msrb.mxu1 %v3235_v28  ;;  %vm754_vm14 = vcmp.eq.s32.totalorder %v714_v4, %v3304_v15 }
 0x13a   :  { %1323 = vmatmul.f32.gmra.mxu3 %v873_v10  ;;  %v874_v63 = vsub.f32 %v872_v21, %v873_v10  ;;  %1466 = vmatpush.msrb.mxu0 %v4865_v8  ;;  %v717_v37 = vpop.permute.xlu0 %716 }
 0x13b   :  { %1571 = vmatpush.msrb.mxu1 %v3248_v22 }
 0x13c   :  { %v875_v14 = vand.u32 4294901760, %v874_v63  ;;  %1470 = vmatpush.msrb.mxu0 %v4866_v25  ;;  %v4869_v63 = vld [vmem:[#allocation41_spill] sm:$0xff]  ;;  %v2674_v25 = vld [vmem:[%s4671_s0 + $0x60] sm:$0xff] }
 0x13d   :  { %v711_v56 = vpop.permute.xlu1 %710 }
 0x13e   :  { %vm753_vm7 = vcmp.eq.s32.totalorder %v711_v56, %v3304_v15  ;;  %876 = vmatmul.f32.gmra.mxu0 %v875_v14 }
 0x13f   :  { %vm769_vm10 = vmor %vm689_vm0, %vm753_vm7  ;;  %1474 = vmatpush.msrb.mxu0 %v4867_v52 }
 0x140   :  { %v3473_v46 = vsel %vm769_vm10, 1.0, %v4737_v3  ;;  %2624 = vset.pattern.permute.xlu1 %v4830_v36  ;;  %2625 = vset.pattern.permute.xlu2 %v4822_v40 }
 0x141   :  { %488 = vperm.xlu1 %2624, %v2670_v18   ;;  %568 = vperm.xlu2 %2625, %v2670_v18   ;;  %v880_v28 = vsub.f32 %v3473_v46, %v3473_v46  ;;  %v477_v24 = vpop.permute.xlu2 %476 }
 0x142   :  { %1097 = vmatmul.f32.gmra.mxu1 %v3473_v46  ;;  %vm515_vm0 = vcmp.eq.s32.totalorder %v477_v24, %v3304_v15  ;;  %v3524_v5 = vpop.permute.xlu0 %731 }
 0x143   :  { %1213 = vmatmul.f32.gmra.mxu2 %v880_v28  ;;  %v881_v33 = vand.u32 4294901760, %v880_v28 }
 0x145   :  { %1329 = vmatmul.f32.gmra.mxu3 %v881_v33  ;;  %v882_v23 = vsub.f32 %v880_v28, %v881_v33  ;;  %v4870_v28 = vld [vmem:[#allocation40_spill] sm:$0xff] }
 0x146   :  { %v474_v39 = vpop.permute.xlu1 %473 }
 0x147   :  { %v883_v0 = vand.u32 4294901760, %v882_v23  ;;  %vm514_vm6 = vcmp.eq.s32.totalorder %v474_v39, %v3304_v15 }
 0x148   :  { %vm530_vm12 = vmor %vm3379_vm11, %vm514_vm6  ;;  %vm755_vm6 = vcmp.eq.s32.totalorder %v717_v37, %v3304_v15 }
 0x149   :  { %2626 = vset.pattern.permute.xlu1 %v4824_v32  ;;  %2627 = vset.pattern.permute.xlu2 %v4835_v48  ;;  %vm610_vm8 = vmor %vm530_vm12, %vm594_vm9 }
 0x14a   :  { %648 = vperm.xlu1 %2626, %v2670_v18   ;;  %884 = vmatmul.f32.gmra.mxu0 %v883_v0  ;;  %v637_v27 = vpop.permute.xlu2 %636 }
 0x14b   :  { %728 = vperm.xlu2 %2627, %v2670_v18   ;;  %vm675_vm10 = vcmp.eq.s32.totalorder %v637_v27, %v3304_v15  ;;  %v640_v59 = vpop.permute.xlu0 %639 }
 0x14f   :  { %v634_v22 = vpop.permute.xlu1 %633 }
 0x150   :  { %vm674_vm13 = vcmp.eq.s32.totalorder %v634_v22, %v3304_v15  ;;  %v4873_v22 = vld [vmem:[#allocation36_spill] sm:$0xff] }
 0x151   :  { %vm690_vm3 = vmor %vm610_vm8, %vm674_vm13 }
 0x152   :  { %vm770_vm15 = vmor %vm690_vm3, %vm754_vm14  ;;  %2629 = vset.pattern.permute.xlu1 %v4829_v34 }
 0x153   :  { %2630 = vset.pattern.permute.xlu2 %v4830_v36  ;;  %411 = vperm.xlu1 %2629, %v2671_v17   ;;  %v3499_v9 = vsel %vm770_vm15, 1.0, %v4737_v3  ;;  %v400_v13 = vpop.permute.xlu2 %399  ;;  %v3550_v21 = vpop.permute.xlu0 %654 }
 0x154   :  { %491 = vperm.xlu2 %2630, %v2671_v17   ;;  %1101 = vmatmul.f32.gmra.mxu1 %v3499_v9  ;;  %v888_v58 = vsub.f32 %v3499_v9, %v3499_v9  ;;  %vm436_vm15 = vcmp.eq.s32.totalorder %v400_v13, %v3304_v15 }
 0x156   :  { %1218 = vmatmul.f32.gmra.mxu2 %v888_v58  ;;  %v889_v53 = vand.u32 4294901760, %v888_v58 }
 0x158   :  { %v397_v57 = vpop.permute.xlu1 %396  ;;  %1335 = vmatmul.f32.gmra.mxu3 %v889_v53  ;;  %v890_v49 = vsub.f32 %v888_v58, %v889_v53  ;;  %v2675_v53 = vld [vmem:[%s4671_s0 + $0x68] sm:$0xff] }
 0x159   :  { %vm435_vm11 = vcmp.eq.s32.totalorder %v397_v57, %v3304_v15 }
 0x15a   :  { %v891_v60 = vand.u32 4294901760, %v890_v49  ;;  %vm451_vm7 = vmor %vm3318_vm4, %vm435_vm11  ;;  %vm292_vm4 = vcmp.eq.s32.totalorder %v4868_v43, %v3304_v15 }
 0x15b   :  { %2631 = vset.pattern.permute.xlu1 %v4822_v40  ;;  %vm531_vm9 = vmor %vm451_vm7, %vm515_vm0 }
 0x15c   :  { %2632 = vset.pattern.permute.xlu2 %v4824_v32  ;;  %571 = vperm.xlu1 %2631, %v2671_v17   ;;  %v560_v2 = vpop.permute.xlu2 %559  ;;  %v563_v14 = vpop.permute.xlu0 %562 }
 0x15d   :  { %651 = vperm.xlu2 %2632, %v2671_v17   ;;  %892 = vmatmul.f32.gmra.mxu0 %v891_v60 }
 0x161   :  { %v557_v16 = vpop.permute.xlu1 %556 }
 0x162   :  { %vm595_vm12 = vcmp.eq.s32.totalorder %v557_v16, %v3304_v15 }
 0x163   :  { %vm611_vm14 = vmor %vm531_vm9, %vm595_vm12  ;;  %vm676_vm9 = vcmp.eq.s32.totalorder %v640_v59, %v3304_v15 }
 0x164   :  { %vm691_vm8 = vmor %vm611_vm14, %vm675_vm10  ;;  %2634 = vset.pattern.permute.xlu1 %v4826_v55  ;;  %vm596_vm10 = vcmp.eq.s32.totalorder %v560_v2, %v3304_v15  ;;  %v3583_v0 = vpop.permute.xlu0 %577 }
 0x165   :  { %vm771_vm13 = vmor %vm691_vm8, %vm755_vm6  ;;  %2635 = vset.pattern.permute.xlu2 %v4829_v34  ;;  %334 = vperm.xlu1 %2634, %v2672_v42   ;;  %v323_v29 = vpop.permute.xlu2 %322 }
 0x166   :  { %414 = vperm.xlu2 %2635, %v2672_v42   ;;  %v3519_v31 = vsel %vm771_vm13, 1.0, %v4737_v3 }
 0x167   :  { %1105 = vmatmul.f32.gmra.mxu1 %v3519_v31  ;;  %v896_v41 = vsub.f32 %v3519_v31, %v3519_v31 }
 0x169   :  { %1223 = vmatmul.f32.gmra.mxu2 %v896_v41  ;;  %v897_v45 = vand.u32 4294901760, %v896_v41 }
 0x16a   :  { %v320_v47 = vpop.permute.xlu1 %319 }
 0x16b   :  { %1341 = vmatmul.f32.gmra.mxu3 %v897_v45  ;;  %v898_v61 = vsub.f32 %v896_v41, %v897_v45  ;;  %vm356_vm3 = vcmp.eq.s32.totalorder %v320_v47, %v3304_v15  ;;  %v2676_v47 = vld [vmem:[%s4671_s0 + $0x70] sm:$0xff]  ;;  %s2744_s0 = smov [#allocation5]  }
 0x16c   :  { %vm372_vm11 = vmor %vm292_vm4, %vm356_vm3  ;;  %vm357_vm4 = vcmp.eq.s32.totalorder %v323_v29, %v3304_v15  ;;  %s2463_s8 = sshll.u32 %s2744_s0, 4  ;;  %s2464_s8 = int_to_ptr.vmem [resolvable:$true] %s2463_s8 }
 0x16d   :  { %2636 = vset.pattern.permute.xlu1 %v4830_v36  ;;  %v899_v50 = vand.u32 4294901760, %v898_v61  ;;  %vm452_vm7 = vmor %vm372_vm11, %vm436_vm15  ;;  %vm293_vm15 = vcmp.eq.s32.totalorder %v4869_v63, %v3304_v15  ;;  %v486_v13 = vpop.permute.xlu0 %485 }
 0x16e   :  { %2637 = vset.pattern.permute.xlu2 %v4822_v40  ;;  %494 = vperm.xlu1 %2636, %v2672_v42   ;;  %v483_v35 = vpop.permute.xlu2 %482  ;;  %vm373_vm11 = vmor %vm293_vm15, %vm357_vm4  ;;  %vm439_vm4 = vcmp.eq.s32.totalorder %v3262_v12, %v3304_v15 }
 0x16f   :  { %574 = vperm.xlu2 %2637, %v2672_v42   ;;  %900 = vmatmul.f32.gmra.mxu0 %v899_v50 }
 0x173   :  { %v480_v62 = vpop.permute.xlu1 %479 }
 0x174   :  { %vm516_vm0 = vcmp.eq.s32.totalorder %v480_v62, %v3304_v15  ;;  %v237_v62 = vld [vmem:[#allocation2 + $0x78] sm:$0xff] }
 0x175   :  { %vm532_vm6 = vmor %vm452_vm7, %vm516_vm0  ;;  %vm517_vm0 = vcmp.eq.s32.totalorder %v483_v35, %v3304_v15 }
 0x176   :  { %2639 = vset.pattern.permute.xlu1 %v4835_v48  ;;  %vm612_vm12 = vmor %vm532_vm6, %vm596_vm10  ;;  %vm597_vm10 = vcmp.eq.s32.totalorder %v563_v14, %v3304_v15 }
 0x177   :  { %2640 = vset.pattern.permute.xlu2 %v4826_v55  ;;  %734 = vperm.xlu1 %2639, %v2672_v42   ;;  %v723_v1 = vpop.permute.xlu2 %722  ;;  %vm692_vm14 = vmor %vm612_vm12, %vm676_vm9 }
 0x178   :  { %337 = vperm.xlu2 %2640, %v2673_v26   ;;  %vm757_vm9 = vcmp.eq.s32.totalorder %v723_v1, %v3304_v15 }
 0x17c   :  { %v720_v54 = vpop.permute.xlu1 %719 }
 0x17d   :  { %vm756_vm8 = vcmp.eq.s32.totalorder %v720_v54, %v3304_v15 }
 0x17e   :  { %vm772_vm13 = vmor %vm692_vm14, %vm756_vm8 }
 0x17f   :  { %v3542_v19 = vsel %vm772_vm13, 1.0, %v4737_v3  ;;  %2641 = vset.pattern.permute.xlu1 %v4829_v34 }
 0x180   :  { %2642 = vset.pattern.permute.xlu2 %v4830_v36  ;;  %417 = vperm.xlu1 %2641, %v2673_v26   ;;  %v3546_v6 = vpop.permute.xlu2 %405  ;;  %v904_v7 = vsub.f32 %v3542_v19, %v3542_v19 }
 0x181   :  { %497 = vperm.xlu2 %2642, %v2673_v26   ;;  %1109 = vmatmul.f32.gmra.mxu1 %v3542_v19 }
 0x182   :  { %1228 = vmatmul.f32.gmra.mxu2 %v904_v7  ;;  %v905_v20 = vand.u32 4294901760, %v904_v7 }
 0x184   :  { %1347 = vmatmul.f32.gmra.mxu3 %v905_v20  ;;  %v906_v10 = vsub.f32 %v904_v7, %v905_v20 }
 0x185   :  { %v403_v4 = vpop.permute.xlu1 %402 }
 0x186   :  { %vm437_vm3 = vcmp.eq.s32.totalorder %v403_v4, %v3304_v15  ;;  %v907_v38 = vand.u32 4294901760, %v906_v10 }
 0x187   :  { %vm453_vm7 = vmor %vm373_vm11, %vm437_vm3  ;;  %vm295_vm3 = vcmp.eq.s32.totalorder %v4870_v28, %v3304_v15 }
 0x188   :  { %2644 = vset.pattern.permute.xlu1 %v4824_v32  ;;  %908 = vmatmul.f32.gmra.mxu0 %v907_v38  ;;  %vm533_vm6 = vmor %vm453_vm7, %vm517_vm0 }
 0x189   :  { %2645 = vset.pattern.permute.xlu2 %v4835_v48  ;;  %657 = vperm.xlu1 %2644, %v2673_v26   ;;  %v646_v8 = vpop.permute.xlu2 %645  ;;  %vm613_vm12 = vmor %vm533_vm6, %vm597_vm10  ;;  %vm294_vm10 = vcmp.eq.s32.totalorder %v4873_v22, %v3304_v15  ;;  %vm438_vm6 = vcmp.eq.s32.totalorder %v3546_v6, %v3304_v15 }
 0x18a   :  { %737 = vperm.xlu2 %2645, %v2673_v26   ;;  %v3628_v26 = vand.u32 4294901760, %v237_v62 }
 0x18c   :  { %1638 = vmatpush.msrb.mxu2 %v3628_v26  ;;  %v3633_v6 = vsub.f32 %v237_v62, %v3628_v26  ;;  %2089 = vmatpush.msra.mxu1 %v3628_v26 }
 0x18e   :  { %v643_v56 = vpop.permute.xlu1 %642  ;;  %v1800_v7 = vand.u32 4294901760, %v3633_v6  ;;  %1961 = vmatpush.msra.mxu0 %v3633_v6 }
 0x18f   :  { %vm677_vm14 = vcmp.eq.s32.totalorder %v643_v56, %v3304_v15 }
 0x190   :  { %vm693_vm8 = vmor %vm613_vm12, %vm677_vm14  ;;  %vm518_vm12 = vcmp.eq.s32.totalorder %v486_v13, %v3304_v15  ;;  %v1801_v20 = vsub.f32 %v3633_v6, %v1800_v7  ;;  %v234_v13 = vld [vmem:[#allocation2 + $0x60] sm:$0xff] }
 0x191   :  { %vm773_vm13 = vmor %vm693_vm8, %vm757_vm9  ;;  %2646 = vset.pattern.permute.xlu1 %v4826_v55 }
 0x192   :  { %2647 = vset.pattern.permute.xlu2 %v4829_v34  ;;  %340 = vperm.xlu1 %2646, %v2674_v25   ;;  %v329_v52 = vpop.permute.xlu2 %328  ;;  %v3571_v18 = vsel %vm773_vm13, 1.0, %v4737_v3  ;;  %v1802_v4 = vand.u32 4294901760, %v1801_v20 }
 0x193   :  { %420 = vperm.xlu2 %2647, %v2674_v25   ;;  %vm359_vm15 = vcmp.eq.s32.totalorder %v329_v52, %v3304_v15  ;;  %1113 = vmatmul.f32.gmra.mxu1 %v3571_v18  ;;  %v912_v12 = vsub.f32 %v3571_v18, %v3571_v18 }
 0x194   :  { %vm375_vm11 = vmor %vm295_vm3, %vm359_vm15  ;;  %1803 = vmatpush.msrb.mxu3 %v1802_v4 }
 0x195   :  { %1233 = vmatmul.f32.gmra.mxu2 %v912_v12  ;;  %v913_v24 = vand.u32 4294901760, %v912_v12  ;;  %vm3579_vm0 = vmor %vm375_vm11, %vm439_vm4  ;;  %vm678_vm4 = vcmp.eq.s32.totalorder %v646_v8, %v3304_v15 }
 0x197   :  { %v326_v23 = vpop.permute.xlu1 %325  ;;  %1353 = vmatmul.f32.gmra.mxu3 %v913_v24  ;;  %v914_v39 = vsub.f32 %v912_v12, %v913_v24 }
 0x198   :  { %vm358_vm7 = vcmp.eq.s32.totalorder %v326_v23, %v3304_v15 }
 0x199   :  { %v915_v27 = vand.u32 4294901760, %v914_v39  ;;  %vm374_vm9 = vmor %vm294_vm10, %vm358_vm7 }
 0x19a   :  { %2648 = vset.pattern.permute.xlu1 %v4822_v40  ;;  %vm454_vm14 = vmor %vm374_vm9, %vm438_vm6 }
 0x19b   :  { %2649 = vset.pattern.permute.xlu2 %v4824_v32  ;;  %580 = vperm.xlu1 %2648, %v2674_v25   ;;  %v569_v58 = vpop.permute.xlu2 %568  ;;  %vm534_vm13 = vmor %vm454_vm14, %vm518_vm12 }
 0x19c   :  { %660 = vperm.xlu2 %2649, %v2674_v25   ;;  %916 = vmatmul.f32.gmra.mxu0 %v915_v27  ;;  %vm599_vm6 = vcmp.eq.s32.totalorder %v569_v58, %v3304_v15  ;;  %v3691_v58 = vand.u32 4294901760, %v234_v13 }
 0x1a0   :  { %v566_v17 = vpop.permute.xlu1 %565 }
 0x1a1   :  { %vm598_vm8 = vcmp.eq.s32.totalorder %v566_v17, %v3304_v15 }
 0x1a2   :  { %vm614_vm3 = vmor %vm534_vm13, %vm598_vm8 }
 0x1a3   :  { %2650 = vset.pattern.permute.xlu1 %v4835_v48  ;;  %vm694_vm15 = vmor %vm614_vm3, %vm678_vm4 }
 0x1a4   :  { %2651 = vset.pattern.permute.xlu2 %v4826_v55  ;;  %740 = vperm.xlu1 %2650, %v2674_v25  }
 0x1a5   :  { %343 = vperm.xlu2 %2651, %v2675_v53   ;;  %v729_v2 = vpop.permute.xlu2 %728 }
 0x1a6   :  { %vm759_vm12 = vcmp.eq.s32.totalorder %v729_v2, %v3304_v15 }
 0x1aa   :  { %v726_v57 = vpop.permute.xlu1 %725 }
 0x1ab   :  { %vm758_vm11 = vcmp.eq.s32.totalorder %v726_v57, %v3304_v15  ;;  %v3699_v57 = vsub.f32 %v234_v13, %v3691_v58 }
 0x1ac   :  { %vm774_vm7 = vmor %vm694_vm15, %vm758_vm11  ;;  %2653 = vset.pattern.permute.xlu1 %v4830_v36 }
 0x1ad   :  { %v3603_v49 = vsel %vm774_vm7, 1.0, %v4737_v3  ;;  %503 = vperm.xlu1 %2653, %v2675_v53   ;;  %2654 = vset.pattern.permute.xlu2 %v4822_v40  ;;  %vm760_vm7 = vcmp.eq.s32.totalorder %v3524_v5, %v3304_v15 }
 0x1ae   :  { %1117 = vmatmul.f32.gmra.mxu1 %v3603_v49  ;;  %v920_v60 = vsub.f32 %v3603_v49, %v3603_v49  ;;  %583 = vperm.xlu2 %2654, %v2675_v53   ;;  %v492_v41 = vpop.permute.xlu2 %491 }
 0x1af   :  { %vm520_vm3 = vcmp.eq.s32.totalorder %v492_v41, %v3304_v15 }
 0x1b0   :  { %1238 = vmatmul.f32.gmra.mxu2 %v920_v60  ;;  %v921_v37 = vand.u32 4294901760, %v920_v60 }
 0x1b2   :  { %1359 = vmatmul.f32.gmra.mxu3 %v921_v37  ;;  %v922_v16 = vsub.f32 %v920_v60, %v921_v37  ;;  %v1818_v60 = vand.u32 4294901760, %v3699_v57  ;;  %v233_v37 = vld [vmem:[#allocation2 + $0x58] sm:$0xff] }
 0x1b3   :  { %v489_v42 = vpop.permute.xlu1 %488 }
 0x1b4   :  { %v923_v29 = vand.u32 4294901760, %v922_v16  ;;  %vm519_vm10 = vcmp.eq.s32.totalorder %v489_v42, %v3304_v15 }
 0x1b5   :  { %2655 = vset.pattern.permute.xlu1 %v4824_v32  ;;  %vm535_vm9 = vmor %vm3579_vm0, %vm519_vm10 }
 0x1b6   :  { %663 = vperm.xlu1 %2655, %v2675_v53   ;;  %924 = vmatmul.f32.gmra.mxu0 %v923_v29  ;;  %vm615_vm14 = vmor %vm535_vm9, %vm599_vm6  ;;  %v3708_v29 = vand.u32 4294901760, %v233_v37 }
 0x1b7   :  { %2656 = vset.pattern.permute.xlu2 %v4835_v48  ;;  %v652_v35 = vpop.permute.xlu2 %651 }
 0x1b8   :  { %743 = vperm.xlu2 %2656, %v2675_v53   ;;  %vm680_vm11 = vcmp.eq.s32.totalorder %v652_v35, %v3304_v15 }
 0x1bc   :  { %v649_v45 = vpop.permute.xlu1 %648 }
 0x1bd   :  { %vm679_vm8 = vcmp.eq.s32.totalorder %v649_v45, %v3304_v15 }
 0x1be   :  { %vm695_vm13 = vmor %vm615_vm14, %vm679_vm8  ;;  %2658 = vset.pattern.permute.xlu1 %v4829_v34 }
 0x1bf   :  { %vm775_vm4 = vmor %vm695_vm13, %vm759_vm12  ;;  %426 = vperm.xlu1 %2658, %v2676_v47  }
 0x1c0   :  { %v3622_v61 = vsel %vm775_vm4, 1.0, %v4737_v3  ;;  %2659 = vset.pattern.permute.xlu2 %v4830_v36  ;;  %v415_v10 = vpop.permute.xlu2 %414 }
 0x1c1   :  { %1121 = vmatmul.f32.gmra.mxu1 %v3622_v61  ;;  %v928_v50 = vsub.f32 %v3622_v61, %v3622_v61  ;;  %506 = vperm.xlu2 %2659, %v2676_v47   ;;  %vm441_vm13 = vcmp.eq.s32.totalorder %v415_v10, %v3304_v15 }
 0x1c3   :  { %1243 = vmatmul.f32.gmra.mxu2 %v928_v50  ;;  %v929_v43 = vand.u32 4294901760, %v928_v50 }
 0x1c5   :  { %v412_v59 = vpop.permute.xlu1 %411  ;;  %1365 = vmatmul.f32.gmra.mxu3 %v929_v43  ;;  %v930_v1 = vsub.f32 %v928_v50, %v929_v43  ;;  %v232_v43 = vld [vmem:[#allocation2 + $0x50] sm:$0xff] }
 0x1c6   :  { %vm440_vm0 = vcmp.eq.s32.totalorder %v412_v59, %v3304_v15  ;;  %v3728_v62 = vand.u32 4294901760, %v232_v43 }
 0x1c7   :  { %2660 = vset.pattern.permute.xlu1 %v4822_v40  ;;  %v931_v54 = vand.u32 4294901760, %v930_v1  ;;  %vm456_vm15 = vmor %vm3347_vm1, %vm440_vm0 }
 0x1c8   :  { %586 = vperm.xlu1 %2660, %v2676_v47   ;;  %vm536_vm10 = vmor %vm456_vm15, %vm520_vm3  ;;  %vm681_vm3 = vcmp.eq.s32.totalorder %v3550_v21, %v3304_v15  ;;  %v1819_v21 = vsub.f32 %v3699_v57, %v1818_v60  ;;  %v3735_v10 = vsub.f32 %v232_v43, %v3728_v62 }
 0x1c9   :  { %932 = vmatmul.f32.gmra.mxu0 %v931_v54  ;;  %2661 = vset.pattern.permute.xlu2 %v4824_v32  ;;  %v236_v32 = vld [vmem:[#allocation2 + $0x70] sm:$0xff]  ;;  %v575_v28 = vpop.permute.xlu2 %574 }
 0x1ca   :  { %666 = vperm.xlu2 %2661, %v2676_v47   ;;  %v3651_v63 = vand.u32 4294901760, %v236_v32  ;;  %vm601_vm0 = vcmp.eq.s32.totalorder %v575_v28, %v3304_v15  ;;  %v1820_v2 = vand.u32 4294901760, %v1819_v21  ;;  %v4875_v54 = vld [vmem:[#allocation42_spill] sm:$0xff] }
 0x1cc   :  { %1640 = vmatpush.msrb.mxu2 %v3651_v63  ;;  %v3659_v5 = vsub.f32 %v236_v32, %v3651_v63  ;;  %2091 = vmatpush.msra.mxu1 %v3651_v63  ;;  %v1830_v32 = vand.u32 4294901760, %v3735_v10 }
 0x1ce   :  { %v572_v38 = vpop.permute.xlu1 %571  ;;  %v1806_v14 = vand.u32 4294901760, %v3659_v5  ;;  %1964 = vmatpush.msra.mxu0 %v3659_v5 }
 0x1cf   :  { %vm600_vm6 = vcmp.eq.s32.totalorder %v572_v38, %v3304_v15 }
 0x1d0   :  { %vm616_vm9 = vmor %vm536_vm10, %vm600_vm6  ;;  %2663 = vset.pattern.permute.xlu1 %v4826_v55  ;;  %v1807_v25 = vsub.f32 %v3659_v5, %v1806_v14 }
 0x1d1   :  { %vm696_vm12 = vmor %vm616_vm9, %vm680_vm11  ;;  %349 = vperm.xlu1 %2663, %v2677_v44  }
 0x1d2   :  { %vm776_vm1 = vmor %vm696_vm12, %vm760_vm7  ;;  %2664 = vset.pattern.permute.xlu2 %v4829_v34  ;;  %v235_v34 = vld [vmem:[#allocation2 + $0x68] sm:$0xff]  ;;  %v1808_v33 = vand.u32 4294901760, %v1807_v25  ;;  %v338_v53 = vpop.permute.xlu2 %337 }
 0x1d3   :  { %v3662_v8 = vsel %vm776_vm1, 1.0, %v4737_v3  ;;  %429 = vperm.xlu2 %2664, %v2677_v44   ;;  %v3673_v52 = vand.u32 4294901760, %v235_v34  ;;  %vm362_vm1 = vcmp.eq.s32.totalorder %v338_v53, %v3304_v15  ;;  %v229_v53 = vld [vmem:[#allocation2 + $0x38] sm:$0xff] }
 0x1d4   :  { %1125 = vmatmul.f32.gmra.mxu1 %v3662_v8  ;;  %v936_v55 = vsub.f32 %v3662_v8, %v3662_v8  ;;  %1809 = vmatpush.msrb.mxu3 %v1808_v33  ;;  %v3773_v21 = vand.u32 4294901760, %v229_v53 }
 0x1d5   :  { %1642 = vmatpush.msrb.mxu2 %v3673_v52  ;;  %v3677_v23 = vsub.f32 %v235_v34, %v3673_v52  ;;  %2093 = vmatpush.msra.mxu1 %v3673_v52 }
 0x1d6   :  { %1248 = vmatmul.f32.gmra.mxu2 %v936_v55  ;;  %v937_v56 = vand.u32 4294901760, %v936_v55  ;;  %v3784_v43 = vsub.f32 %v229_v53, %v3773_v21 }
 0x1d7   :  { %v335_v12 = vpop.permute.xlu1 %334  ;;  %v1812_v27 = vand.u32 4294901760, %v3677_v23  ;;  %1967 = vmatpush.msra.mxu0 %v3677_v23  ;;  %1644 = vmatpush.msrb.mxu2 %v3691_v58 }
 0x1d8   :  { %1371 = vmatmul.f32.gmra.mxu3 %v937_v56  ;;  %v938_v24 = vsub.f32 %v936_v55, %v937_v56  ;;  %vm361_vm14 = vcmp.eq.s32.totalorder %v335_v12, %v3304_v15  ;;  %2095 = vmatpush.msra.mxu1 %v3691_v58 }
 0x1d9   :  { %2665 = vset.pattern.permute.xlu1 %v4830_v36  ;;  %v1813_v22 = vsub.f32 %v3677_v23, %v1812_v27  ;;  %v4874_v36 = vld [vmem:[#allocation37_spill] sm:$0xff]  ;;  %1970 = vmatpush.msra.mxu0 %v3699_v57  ;;  %v4879_v23 = vld [vmem:[#allocation14_spill] sm:$0xff] }
 0x1da   :  { %509 = vperm.xlu1 %2665, %v2677_v44   ;;  %v939_v39 = vand.u32 4294901760, %v938_v24  ;;  %vm297_vm8 = vcmp.eq.s32.totalorder %v4874_v36, %v3304_v15  ;;  %1646 = vmatpush.msrb.mxu2 %v3708_v29  ;;  %v230_v24 = vld [vmem:[#allocation2 + $0x40] sm:$0xff] }
 0x1db   :  { %2666 = vset.pattern.permute.xlu2 %v4822_v40  ;;  %vm377_vm4 = vmor %vm297_vm8, %vm361_vm14  ;;  %v1814_v17 = vand.u32 4294901760, %v1813_v22  ;;  %v498_v16 = vpop.permute.xlu2 %497  ;;  %2097 = vmatpush.msra.mxu1 %v3708_v29  ;;  %vm298_vm14 = vcmp.eq.s32.totalorder %v4875_v54, %v3304_v15 }
 0x1dc   :  { %940 = vmatmul.f32.gmra.mxu0 %v939_v39  ;;  %589 = vperm.xlu2 %2666, %v2677_v44   ;;  %vm457_vm15 = vmor %vm377_vm4, %vm441_vm13  ;;  %vm522_vm8 = vcmp.eq.s32.totalorder %v498_v16, %v3304_v15  ;;  %vm602_vm13 = vcmp.eq.s32.totalorder %v3583_v0, %v3304_v15  ;;  %v231_v0 = vld [vmem:[#allocation2 + $0x48] sm:$0xff]  ;;  %v3760_v39 = vand.u32 4294901760, %v230_v24 }
 0x1dd   :  { %1815 = vmatpush.msrb.mxu3 %v1814_v17  ;;  %1648 = vmatpush.msrb.mxu2 %v3728_v62  ;;  %vm378_vm4 = vmor %vm298_vm14, %vm362_vm1  ;;  %v3746_v34 = vand.u32 4294901760, %v231_v0 }
 0x1de   :  { %2099 = vmatpush.msra.mxu1 %v3728_v62 }
 0x1df   :  { %1821 = vmatpush.msrb.mxu3 %v1820_v2  ;;  %1650 = vmatpush.msrb.mxu2 %v3746_v34  ;;  %v3752_v25 = vsub.f32 %v231_v0, %v3746_v34 }
 0x1e0   :  { %v495_v40 = vpop.permute.xlu1 %494  ;;  %2101 = vmatpush.msra.mxu1 %v3746_v34 }
 0x1e1   :  { %vm521_vm11 = vcmp.eq.s32.totalorder %v495_v40, %v3304_v15  ;;  %v1836_v12 = vand.u32 4294901760, %v3752_v25  ;;  %1652 = vmatpush.msrb.mxu2 %v3760_v39  ;;  %v3771_v40 = vsub.f32 %v230_v24, %v3760_v39 }
 0x1e2   :  { %vm537_vm7 = vmor %vm457_vm15, %vm521_vm11  ;;  %2668 = vset.pattern.permute.xlu1 %v4835_v48  ;;  %v3713_v48 = vsub.f32 %v233_v37, %v3708_v29  ;;  %2103 = vmatpush.msra.mxu1 %v3760_v39 }
 0x1e3   :  { %vm617_vm10 = vmor %vm537_vm7, %vm601_vm0  ;;  %749 = vperm.xlu1 %2668, %v2677_v44   ;;  %v1831_v44 = vsub.f32 %v3735_v10, %v1830_v32  ;;  %v1837_v36 = vsub.f32 %v3752_v25, %v1836_v12  ;;  %v4722_v16 = vand.u32 4294901760, %v3771_v40  ;;  %1654 = vmatpush.msrb.mxu2 %v3773_v21  ;;  %v4882_v57 = vand.u32 4294901760, %v3771_v40 }
 0x1e4   :  { %vm697_vm6 = vmor %vm617_vm10, %vm681_vm3  ;;  %v1824_v47 = vand.u32 4294901760, %v3713_v48  ;;  %1973 = vmatpush.msra.mxu0 %v3713_v48  ;;  %v738_v4 = vpop.permute.xlu2 %737  ;;  %2105 = vmatpush.msra.mxu1 %v3773_v21 }
 0x1e5   :  { %v1832_v55 = vand.u32 4294901760, %v1831_v44  ;;  %vm762_vm7 = vcmp.eq.s32.totalorder %v738_v4, %v3304_v15  ;;  %v1838_v13 = vand.u32 4294901760, %v1837_v36  ;;  %v501_v4 = vpop.permute.xlu0 %500 }
 0x1e6   :  { %v1825_v35 = vsub.f32 %v3713_v48, %v1824_v47  ;;  %1976 = vmatpush.msra.mxu0 %v3735_v10 }
 0x1e8   :  { %v1826_v1 = vand.u32 4294901760, %v1825_v35  ;;  %1979 = vmatpush.msra.mxu0 %v3752_v25 }
 0x1e9   :  { %v735_v42 = vpop.permute.xlu1 %734 }
 0x1ea   :  { %vm761_vm9 = vcmp.eq.s32.totalorder %v735_v42, %v3304_v15  ;;  %1827 = vmatpush.msrb.mxu3 %v1826_v1  ;;  %1982 = vmatpush.msra.mxu0 %v3771_v40  ;;  %v4720_v1 = vand.u32 4294901760, %v3784_v43 }
 0x1eb   :  { %vm777_vm12 = vmor %vm697_vm6, %vm761_vm9 }
 0x1ec   :  { %v3717_v41 = vsel %vm777_vm12, 1.0, %v4737_v3  ;;  %1833 = vmatpush.msrb.mxu3 %v1832_v55  ;;  %1985 = vmatpush.msra.mxu0 %v3784_v43 }
 0x1ed   :  { %1129 = vmatmul.f32.gmra.mxu1 %v3717_v41  ;;  %v944_v45 = vsub.f32 %v3717_v41, %v3717_v41  ;;  %v421_v28 = vpop.permute.xlu2 %420 }
 0x1ee   :  { %1839 = vmatpush.msrb.mxu3 %v1838_v13  ;;  %vm443_vm14 = vcmp.eq.s32.totalorder %v421_v28, %v3304_v15 }
 0x1ef   :  { %1253 = vmatmul.f32.gmra.mxu2 %v944_v45  ;;  %v945_v50 = vand.u32 4294901760, %v944_v45 }
 0x1f1   :  { %1377 = vmatmul.f32.gmra.mxu3 %v945_v50  ;;  %v946_v59 = vsub.f32 %v944_v45, %v945_v50  ;;  %v1843_v45 = vsub.f32 %v3771_v40, %v4722_v16 }
 0x1f2   :  { %v418_v20 = vpop.permute.xlu1 %417 }
 0x1f3   :  { %vm442_vm0 = vcmp.eq.s32.totalorder %v418_v20, %v3304_v15  ;;  %v947_v38 = vand.u32 4294901760, %v946_v59  ;;  %v1844_v35 = vand.u32 4294901760, %v1843_v45  ;;  %v4876_v59 = vld [vmem:[#allocation44_spill] sm:$0xff]  ;;  %v1849_v20 = vsub.f32 %v3784_v43, %v4720_v1 }
 0x1f4   :  { %vm458_vm3 = vmor %vm378_vm4, %vm442_vm0  ;;  %vm299_vm1 = vcmp.eq.s32.totalorder %v4876_v59, %v3304_v15 }
 0x1f5   :  { %vm538_vm15 = vmor %vm458_vm3, %vm522_vm8  ;;  %948 = vmatmul.f32.gmra.mxu0 %v947_v38  ;;  %1845 = vmatpush.msrb.mxu3 %v1844_v35  ;;  %v228_v38 = vld [vmem:[#allocation2 + $0x30] sm:$0xff]  ;;  %v1850_v44 = vand.u32 4294901760, %v1849_v20  ;;  %v226_v20 = vld [vmem:[#allocation2 + $0x20] sm:$0xff] }
 0x1f6   :  { %vm618_vm11 = vmor %vm538_vm15, %vm602_vm13  ;;  %v661_v50 = vpop.permute.xlu2 %660  ;;  %vm523_vm13 = vcmp.eq.s32.totalorder %v501_v4, %v3304_v15  ;;  %v3795_v55 = vand.u32 4294901760, %v228_v38 }
 0x1f7   :  { %1851 = vmatpush.msrb.mxu3 %v1850_v44  ;;  %vm683_vm15 = vcmp.eq.s32.totalorder %v661_v50, %v3304_v15  ;;  %v4877_v44 = vld [vmem:[#allocation39_spill] sm:$0xff] }
 0x1f8   :  { %1656 = vmatpush.msrb.mxu2 %v3795_v55  ;;  %2107 = vmatpush.msra.mxu1 %v3795_v55 }
 0x1fb   :  { %v658_v56 = vpop.permute.xlu1 %657 }
 0x1fc   :  { %vm682_vm10 = vcmp.eq.s32.totalorder %v658_v56, %v3304_v15  ;;  %v3800_v56 = vsub.f32 %v228_v38, %v3795_v55  ;;  %v3829_v38 = vand.u32 4294901760, %v226_v20 }
 0x1fd   :  { %vm698_vm6 = vmor %vm618_vm11, %vm682_vm10 }
 0x1fe   :  { %vm778_vm9 = vmor %vm698_vm6, %vm762_vm7  ;;  %v4719_v28 = vand.u32 4294901760, %v3800_v56  ;;  %1988 = vmatpush.msra.mxu0 %v3800_v56 }
 0x1ff   :  { %v3758_v33 = vsel %vm778_vm9, 1.0, %v4737_v3  ;;  %v344_v0 = vpop.permute.xlu2 %343 }
 0x200   :  { %1133 = vmatmul.f32.gmra.mxu1 %v3758_v33  ;;  %v952_v22 = vsub.f32 %v3758_v33, %v3758_v33  ;;  %vm364_vm9 = vcmp.eq.s32.totalorder %v344_v0, %v3304_v15  ;;  %v3836_v0 = vsub.f32 %v226_v20, %v3829_v38 }
 0x202   :  { %1258 = vmatmul.f32.gmra.mxu2 %v952_v22  ;;  %v953_v17 = vand.u32 4294901760, %v952_v22 }
 0x204   :  { %v341_v2 = vpop.permute.xlu1 %340  ;;  %1383 = vmatmul.f32.gmra.mxu3 %v953_v17  ;;  %v954_v37 = vsub.f32 %v952_v22, %v953_v17  ;;  %v1855_v22 = vsub.f32 %v3800_v56, %v4719_v28  ;;  %v227_v17 = vld [vmem:[#allocation2 + $0x28] sm:$0xff] }
 0x205   :  { %vm363_vm12 = vcmp.eq.s32.totalorder %v341_v2, %v3304_v15  ;;  %v3813_v2 = vand.u32 4294901760, %v227_v17 }
 0x206   :  { %v955_v42 = vand.u32 4294901760, %v954_v37  ;;  %vm379_vm8 = vmor %vm299_vm1, %vm363_vm12  ;;  %v1856_v36 = vand.u32 4294901760, %v1855_v22  ;;  %vm300_vm12 = vcmp.eq.s32.totalorder %v4877_v44, %v3304_v15 }
 0x207   :  { %vm459_vm4 = vmor %vm379_vm8, %vm443_vm14  ;;  %1658 = vmatpush.msrb.mxu2 %v3813_v2  ;;  %2109 = vmatpush.msra.mxu1 %v3813_v2 }
 0x208   :  { %956 = vmatmul.f32.gmra.mxu0 %v955_v42  ;;  %vm539_vm3 = vmor %vm459_vm4, %vm523_vm13  ;;  %v584_v53 = vpop.permute.xlu2 %583  ;;  %1857 = vmatpush.msrb.mxu3 %v1856_v36  ;;  %v3820_v42 = vsub.f32 %v227_v17, %v3813_v2  ;;  %v4717_v17 = vand.u32 4294901760, %v3836_v0 }
 0x209   :  { %vm380_vm14 = vmor %vm300_vm12, %vm364_vm9  ;;  %1660 = vmatpush.msrb.mxu2 %v3829_v38  ;;  %2111 = vmatpush.msra.mxu1 %v3829_v38 }
 0x20a   :  { %v4718_v50 = vand.u32 4294901760, %v3820_v42  ;;  %1991 = vmatpush.msra.mxu0 %v3820_v42  ;;  %v4887_v10 = vand.u32 4294901760, %v3820_v42 }
 0x20c   :  { %1994 = vmatpush.msra.mxu0 %v3836_v0 }
 0x20d   :  { %v581_v54 = vpop.permute.xlu1 %580 }
 0x20e   :  { %vm603_vm0 = vcmp.eq.s32.totalorder %v581_v54, %v3304_v15  ;;  %v1861_v54 = vsub.f32 %v3820_v42, %v4718_v50 }
 0x20f   :  { %vm619_vm11 = vmor %vm539_vm3, %vm603_vm0  ;;  %vm604_vm0 = vcmp.eq.s32.totalorder %v584_v53, %v3304_v15 }
 0x210   :  { %vm699_vm7 = vmor %vm619_vm11, %vm683_vm15  ;;  %v1862_v22 = vand.u32 4294901760, %v1861_v54 }
 0x212   :  { %v744_v36 = vpop.permute.xlu2 %743  ;;  %1863 = vmatpush.msrb.mxu3 %v1862_v22 }
 0x213   :  { %vm764_vm3 = vcmp.eq.s32.totalorder %v744_v36, %v3304_v15 }
 0x216   :  { %v741_v24 = vpop.permute.xlu1 %740 }
 0x217   :  { %vm763_vm10 = vcmp.eq.s32.totalorder %v741_v24, %v3304_v15  ;;  %v424_v24 = vpop.permute.xlu0 %423 }
 0x218   :  { %vm779_vm6 = vmor %vm699_vm7, %vm763_vm10  ;;  %vm444_vm1 = vcmp.eq.s32.totalorder %v424_v24, %v3304_v15 }
 0x219   :  { %v3811_v13 = vsel %vm779_vm6, 1.0, %v4737_v3  ;;  %vm460_vm13 = vmor %vm380_vm14, %vm444_vm1 }
 0x21a   :  { %1137 = vmatmul.f32.gmra.mxu1 %v3811_v13  ;;  %v960_v37 = vsub.f32 %v3811_v13, %v3811_v13 }
 0x21b   :  { %v507_v44 = vpop.permute.xlu2 %506 }
 0x21c   :  { %1263 = vmatmul.f32.gmra.mxu2 %v960_v37  ;;  %v961_v45 = vand.u32 4294901760, %v960_v37 }
 0x21e   :  { %1389 = vmatmul.f32.gmra.mxu3 %v961_v45  ;;  %v962_v35 = vsub.f32 %v960_v37, %v961_v45  ;;  %v1867_v37 = vsub.f32 %v3836_v0, %v4717_v17 }
 0x21f   :  { %v504_v59 = vpop.permute.xlu1 %503  ;;  %v347_v36 = vpop.permute.xlu0 %346 }
 0x220   :  { %v963_v4 = vand.u32 4294901760, %v962_v35  ;;  %vm524_vm8 = vcmp.eq.s32.totalorder %v504_v59, %v3304_v15  ;;  %v1868_v35 = vand.u32 4294901760, %v1867_v37  ;;  %v225_v59 = vld [vmem:[#allocation2 + $0x18] sm:$0xff]  ;;  %vm365_vm6 = vcmp.eq.s32.totalorder %v347_v36, %v3304_v15 }
 0x221   :  { %vm540_vm4 = vmor %vm460_vm13, %vm524_vm8  ;;  %v3848_v54 = vand.u32 4294901760, %v225_v59  ;;  %vm525_vm8 = vcmp.eq.s32.totalorder %v507_v44, %v3304_v15 }
 0x222   :  { %964 = vmatmul.f32.gmra.mxu0 %v963_v4  ;;  %vm620_vm15 = vmor %vm540_vm4, %vm604_vm0  ;;  %1869 = vmatpush.msrb.mxu3 %v1868_v35 }
 0x223   :  { %1662 = vmatpush.msrb.mxu2 %v3848_v54  ;;  %v3855_v53 = vsub.f32 %v225_v59, %v3848_v54  ;;  %2113 = vmatpush.msra.mxu1 %v3848_v54 }
 0x225   :  { %v4721_v24 = vand.u32 4294901760, %v3855_v53  ;;  %1997 = vmatpush.msra.mxu0 %v3855_v53 }
 0x227   :  { %v1873_v37 = vsub.f32 %v3855_v53, %v4721_v24 }
 0x228   :  { %v664_v45 = vpop.permute.xlu1 %663 }
 0x229   :  { %vm684_vm11 = vcmp.eq.s32.totalorder %v664_v45, %v3304_v15  ;;  %v224_v45 = vld [vmem:[#allocation2 + $0x10] sm:$0xff]  ;;  %v1874_v50 = vand.u32 4294901760, %v1873_v37 }
 0x22a   :  { %vm700_vm7 = vmor %vm620_vm15, %vm684_vm11  ;;  %v3866_v17 = vand.u32 4294901760, %v224_v45 }
 0x22b   :  { %vm780_vm10 = vmor %vm700_vm7, %vm764_vm3  ;;  %1875 = vmatpush.msrb.mxu3 %v1874_v50  ;;  %v747_v50 = vpop.permute.xlu0 %746 }
 0x22c   :  { %v3851_v20 = vsel %vm780_vm10, 1.0, %v4737_v3  ;;  %1664 = vmatpush.msrb.mxu2 %v3866_v17  ;;  %v3870_v1 = vsub.f32 %v224_v45, %v3866_v17  ;;  %2115 = vmatpush.msra.mxu1 %v3866_v17  ;;  %v223_v45 = vld [vmem:[#allocation2 + $0x8] sm:$0xff]  ;;  %vm765_vm3 = vcmp.eq.s32.totalorder %v747_v50, %v3304_v15 }
 0x22d   :  { %1141 = vmatmul.f32.gmra.mxu1 %v3851_v20  ;;  %v968_v4 = vsub.f32 %v3851_v20, %v3851_v20  ;;  %v3883_v36 = vand.u32 4294901760, %v223_v45 }
 0x22e   :  { %v1878_v24 = vand.u32 4294901760, %v3870_v1  ;;  %2000 = vmatpush.msra.mxu0 %v3870_v1 }
 0x22f   :  { %1268 = vmatmul.f32.gmra.mxu2 %v968_v4  ;;  %v969_v22 = vand.u32 4294901760, %v968_v4  ;;  %2117 = vmatpush.msra.mxu1 %v3883_v36 }
 0x230   :  { %v1879_v37 = vsub.f32 %v3870_v1, %v1878_v24  ;;  %1666 = vmatpush.msrb.mxu2 %v3883_v36 }
 0x231   :  { %v427_v35 = vpop.permute.xlu1 %426  ;;  %1395 = vmatmul.f32.gmra.mxu3 %v969_v22  ;;  %v970_v59 = vsub.f32 %v968_v4, %v969_v22  ;;  %v4878_v4 = vld [vmem:[#allocation43_spill] sm:$0xff]  ;;  %v667_v22 = vpop.permute.xlu2 %666 }
 0x232   :  { %vm445_vm9 = vcmp.eq.s32.totalorder %v427_v35, %v3304_v15  ;;  %vm301_vm12 = vcmp.eq.s32.totalorder %v4878_v4, %v3304_v15  ;;  %v222_v35 = vld [vmem:[#allocation2] sm:$0xff]  ;;  %vm685_vm13 = vcmp.eq.s32.totalorder %v667_v22, %v3304_v15  ;;  %v3888_v4 = vsub.f32 %v223_v45, %v3883_v36 }
 0x233   :  { %v971_v28 = vand.u32 4294901760, %v970_v59  ;;  %vm381_vm1 = vmor %vm301_vm12, %vm365_vm6  ;;  %v3890_v16 = vand.u32 4294901760, %v222_v35  ;;  %vm94_vm6 = vcmp.eq.s32.totalorder %v4879_v23, %v2911_v30  ;;  %v4900_v23 = vld [vmem:[#allocation20_spill] sm:$0xff] }
 0x234   :  { %vm461_vm14 = vmor %vm381_vm1, %vm445_vm9  ;;  %v4723_v44 = vand.u32 4294901760, %v3888_v4  ;;  %2003 = vmatpush.msra.mxu0 %v3888_v4 }
 0x235   :  { %972 = vmatmul.f32.gmra.mxu0 %v971_v28  ;;  %v1880_v28 = vand.u32 4294901760, %v1879_v37  ;;  %vm541_vm4 = vmor %vm461_vm14, %vm525_vm8  ;;  %1668 = vmatpush.msrb.mxu2 %v3890_v16  ;;  %v3898_v22 = vsub.f32 %v222_v35, %v3890_v16 }
 0x236   :  { %2119 = vmatpush.msra.mxu1 %v3890_v16  ;;  %v1885_v37 = vsub.f32 %v3888_v4, %v4723_v44 }
 0x237   :  { %1881 = vmatpush.msrb.mxu3 %v1880_v28  ;;  %2220 = vmatpush.msra.mxu2 %v1800_v7  ;;  %v1890_v45 = vand.u32 4294901760, %v3898_v22 }
 0x238   :  { %2006 = vmatpush.msra.mxu0 %v3898_v22  ;;  %v1886_v7 = vand.u32 4294901760, %v1885_v37 }
 0x239   :  { %2224 = vmatpush.msra.mxu2 %v1806_v14  ;;  %v1891_v28 = vsub.f32 %v3898_v22, %v1890_v45  ;;  %v430_v5 = vpop.permute.xlu2 %429 }
 0x23a   :  { %v587_v59 = vpop.permute.xlu1 %586  ;;  %1887 = vmatpush.msrb.mxu3 %v1886_v7  ;;  %vm446_vm14 = vcmp.eq.s32.totalorder %v430_v5, %v3304_v15  ;;  %v4732_v7 = vmov 1.0  }
 0x23b   :  { %vm605_vm0 = vcmp.eq.s32.totalorder %v587_v59, %v3304_v15  ;;  %2228 = vmatpush.msra.mxu2 %v1812_v27  ;;  %v1892_v59 = vand.u32 4294901760, %v1891_v28  ;;  %v4880_v27 = vld [vmem:[#allocation23_spill] sm:$0xff]  ;;  %v4897_v28 = vld [vmem:[#allocation16_spill] sm:$0xff] }
 0x23c   :  { %vm621_vm15 = vmor %vm541_vm4, %vm605_vm0  ;;  %vm158_vm9 = vcmp.eq.s32.totalorder %v4880_v27, %v2911_v30 }
 0x23d   :  { %vm701_vm11 = vmor %vm621_vm15, %vm685_vm13  ;;  %2232 = vmatpush.msra.mxu2 %v1818_v60  ;;  %1893 = vmatpush.msrb.mxu3 %v1892_v59  ;;  %v4883_v60 = vand.u32 4294901760, %v3784_v43  ;;  %v2479_v43 = vsel %vm2921_vm2, 1.0, %v4737_v3  ;;  %v4033_v59 = vpop.f32.mrf.mxu3 }
 0x23e   :  { %vm781_vm7 = vmor %vm701_vm11, %vm765_vm3  ;;  %v3995_v42 = vsub.f32 %v2479_v43, %v2479_v43 }
 0x23f   :  { %v3910_v50 = vsel %vm781_vm7, 1.0, %v4737_v3  ;;  %2236 = vmatpush.msra.mxu2 %v1824_v47  ;;  %2347 = vmatpush.msra.mxu3 %v3628_v26  ;;  %v4881_v26 = vld [vmem:[#allocation47_spill] sm:$0xff]  ;;  %vm3947_vm13 = vmor %vm94_vm6, %vm158_vm9  ;;  %v4886_v47 = vand.u32 4294901760, %v3800_v56  ;;  %v3990_v56 = vpop.f32.mrf.mxu1 }
 0x240   :  { %1145 = vmatmul.f32.gmra.mxu1 %v3910_v50  ;;  %v976_v6 = vsub.f32 %v3910_v50, %v3910_v50  ;;  %vm302_vm12 = vcmp.eq.s32.totalorder %v4881_v26, %v3304_v15 }
 0x241   :  { %2240 = vmatpush.msra.mxu2 %v1830_v32  ;;  %2349 = vmatpush.msra.mxu3 %v3651_v63  ;;  %v2478_v32 = vsel %vm3947_vm13, 1.0, %v4737_v3 }
 0x242   :  { %1273 = vmatmul.f32.gmra.mxu2 %v976_v6  ;;  %v977_v35 = vand.u32 4294901760, %v976_v6  ;;  %v3966_v25 = vsub.f32 %v2478_v32, %v2478_v32 }
 0x243   :  { %v350_v44 = vpop.permute.xlu1 %349  ;;  %2244 = vmatpush.msra.mxu2 %v1836_v12  ;;  %2351 = vmatpush.msra.mxu3 %v3673_v52  ;;  %v590_v52 = vpop.permute.xlu2 %589  ;;  %v4889_v12 = vand.u32 4294901760, %v3855_v53  ;;  %v4893_v53 = vld [vmem:[#allocation13_spill] sm:$0xff] }
 0x244   :  { %1401 = vmatmul.f32.gmra.mxu3 %v977_v35  ;;  %v978_v14 = vsub.f32 %v976_v6, %v977_v35  ;;  %vm366_vm10 = vcmp.eq.s32.totalorder %v350_v44, %v3304_v15  ;;  %vm606_vm3 = vcmp.eq.s32.totalorder %v590_v52, %v3304_v15  ;;  %v4730_v40 = vand.u32 4294901760, %v3966_v25  ;;  %v4018_v6 = vpop.f32.mrf.mxu2 }
 0x245   :  { %2248 = vmatpush.msra.mxu2 %v4882_v57  ;;  %vm382_vm1 = vmor %vm302_vm12, %vm366_vm10  ;;  %2353 = vmatpush.msra.mxu3 %v3691_v58  ;;  %v670_v58 = vpop.permute.xlu0 %669  ;;  %vm96_vm12 = vcmp.eq.s32.totalorder %v4893_v53, %v2911_v30  ;;  %v4729_v44 = vand.u32 4294901760, %v3995_v42  ;;  %v4901_v57 = vld [vmem:[#allocation9_spill] sm:$0xff] }
 0x246   :  { %v979_v37 = vand.u32 4294901760, %v978_v14  ;;  %vm462_vm4 = vmor %vm382_vm1, %vm446_vm14  ;;  %vm686_vm11 = vcmp.eq.s32.totalorder %v670_v58, %v3304_v15 }
 0x247   :  { %2252 = vmatpush.msra.mxu2 %v4883_v60  ;;  %2355 = vmatpush.msra.mxu3 %v3708_v29  ;;  %v4888_v29 = vand.u32 4294901760, %v3836_v0  ;;  %v4031_v35 = vpop.f32.mrf.mxu1 }
 0x248   :  { %980 = vmatmul.f32.gmra.mxu0 %v979_v37 }
 0x249   :  { %2256 = vmatpush.msra.mxu2 %v4886_v47  ;;  %2357 = vmatpush.msra.mxu3 %v3728_v62  ;;  %v4067_v47 = vpop.f32.mrf.mxu3 }
 0x24b   :  { %2260 = vmatpush.msra.mxu2 %v4887_v10  ;;  %2359 = vmatpush.msra.mxu3 %v3746_v34 }
 0x24c   :  { %v510_v63 = vpop.permute.xlu1 %509 }
 0x24d   :  { %vm526_vm8 = vcmp.eq.s32.totalorder %v510_v63, %v3304_v15  ;;  %2264 = vmatpush.msra.mxu2 %v4888_v29  ;;  %2361 = vmatpush.msra.mxu3 %v3760_v39  ;;  %v4059_v63 = vpop.f32.mrf.mxu2  ;;  %v4904_v29 = vld [vmem:[#allocation28_spill] sm:$0xff] }
 0x24e   :  { %vm542_vm0 = vmor %vm462_vm4, %vm526_vm8  ;;  %vm97_vm8 = vcmp.eq.s32.totalorder %v4897_v28, %v2911_v30 }
 0x24f   :  { %vm622_vm15 = vmor %vm542_vm0, %vm606_vm3  ;;  %2268 = vmatpush.msra.mxu2 %v4889_v12  ;;  %2363 = vmatpush.msra.mxu3 %v3773_v21  ;;  %vm162_vm0 = vcmp.eq.s32.totalorder %v4900_v23, %v2911_v30  ;;  %vm98_vm3 = vcmp.eq.s32.totalorder %v4901_v57, %v2911_v30  ;;  %v4061_v52 = vpop.f32.mrf.mxu1  ;;  %v2484_v23 = vsel %vm2941_vm5, 1.0, %v4737_v3 }
 0x250   :  { %vm702_vm7 = vmor %vm622_vm15, %vm686_vm11  ;;  %vm163_vm11 = vcmp.eq.s32.totalorder %v4904_v29, %v2911_v30  ;;  %v4129_v57 = vsub.f32 %v2484_v23, %v2484_v23  ;;  %v4914_v23 = vld [vmem:[#allocation31_spill] sm:$0xff] }
 0x251   :  { %2272 = vmatpush.msra.mxu2 %v1878_v24  ;;  %2365 = vmatpush.msra.mxu3 %v3795_v55  ;;  %v4892_v55 = vld [vmem:[#allocation26_spill] sm:$0xff]  ;;  %vm4063_vm15 = vmor %vm98_vm3, %vm162_vm0 }
 0x252   :  { %vm160_vm9 = vcmp.eq.s32.totalorder %v4892_v55, %v2911_v30  ;;  %v2482_v32 = vsel %vm4063_vm15, 1.0, %v4737_v3  ;;  %v4097_v55 = vpop.f32.mrf.mxu3 }
 0x253   :  { %2367 = vmatpush.msra.mxu3 %v3813_v2  ;;  %v1672_v2 = vsub.f32 %v3966_v25, %v4730_v40  ;;  %vm4003_vm1 = vmor %vm96_vm12, %vm160_vm9 }
 0x254   :  { %v2480_v22 = vsel %vm4003_vm1, 1.0, %v4737_v3 }
 0x255   :  { %v750_v62 = vpop.permute.xlu1 %749  ;;  %2369 = vmatpush.msra.mxu3 %v3829_v38 }
 0x256   :  { %vm766_vm10 = vcmp.eq.s32.totalorder %v750_v62, %v3304_v15  ;;  %v4890_v15 = vand.u32 4294901760, %v3888_v4  ;;  %v1673_v4 = vand.u32 4294901760, %v1672_v2  ;;  %v4077_v62 = vsub.f32 %v2482_v32, %v2482_v32  ;;  %v4910_v32 = vld [vmem:[#allocation17_spill] sm:$0xff] }
 0x257   :  { %vm782_vm6 = vmor %vm702_vm7, %vm766_vm10  ;;  %2371 = vmatpush.msra.mxu3 %v3848_v54  ;;  %v4014_v54 = vpop.f32.mrf.mxu0  ;;  %v4091_v43 = vpop.f32.mrf.mxu1  ;;  %vm101_vm9 = vcmp.eq.s32.totalorder %v4910_v32, %v2911_v30 }
 0x258   :  { %v3975_v34 = vsel %vm782_vm6, 1.0, %v4737_v3  ;;  %2276 = vmatpush.msra.mxu2 %v4890_v15  ;;  %v4089_v15 = vpop.f32.mrf.mxu2  ;;  %v4725_v2 = vand.u32 4294901760, %v4077_v62 }
 0x259   :  { %1149 = vmatmul.f32.gmra.mxu1 %v3975_v34  ;;  %v984_v39 = vsub.f32 %v3975_v34, %v3975_v34  ;;  %2373 = vmatpush.msra.mxu3 %v3866_v17  ;;  %v4021_v17 = vsub.f32 %v2480_v22, %v2480_v22 }
 0x25a   :  { %2280 = vmatpush.msra.mxu2 %v1890_v45  ;;  %v4896_v45 = vld [vmem:[#allocation25_spill] sm:$0xff] }
 0x25b   :  { %1278 = vmatmul.f32.gmra.mxu2 %v984_v39  ;;  %v985_v1 = vand.u32 4294901760, %v984_v39  ;;  %2375 = vmatpush.msra.mxu3 %v3883_v36  ;;  %vm161_vm14 = vcmp.eq.s32.totalorder %v4896_v45, %v2911_v30  ;;  %v1680_v36 = vsub.f32 %v3995_v42, %v4729_v44  ;;  %v4728_v14 = vand.u32 4294901760, %v4021_v17 }
 0x25c   :  { %vm4035_vm4 = vmor %vm97_vm8, %vm161_vm14  ;;  %vm166_vm14 = vcmp.eq.s32.totalorder %v4914_v23, %v2911_v30 }
 0x25d   :  { %1407 = vmatmul.f32.gmra.mxu3 %v985_v1  ;;  %v986_v0 = vsub.f32 %v984_v39, %v985_v1  ;;  %v1681_v5 = vand.u32 4294901760, %v1680_v36  ;;  %v2481_v37 = vsel %vm4035_vm4, 1.0, %v4737_v3  ;;  %v4905_v39 = vld [vmem:[#allocation10_spill] sm:$0xff]  ;;  %v4119_v36 = vpop.f32.mrf.mxu3 }
 0x25e   :  { %2377 = vmatpush.msra.mxu3 %v3890_v16  ;;  %v4047_v27 = vsub.f32 %v2481_v37, %v2481_v37  ;;  %vm99_vm7 = vcmp.eq.s32.totalorder %v4905_v39, %v2911_v30  ;;  %v4911_v39 = vmov 0  ;;  %v4923_v37 = vld [vmem:[#allocation24_spill] sm:$0xff] }
 0x25f   :  { %v987_v38 = vand.u32 4294901760, %v986_v0  ;;  %v4049_v26 = vpop.f32.mrf.mxu0  ;;  %vm4093_vm10 = vmor %vm99_vm7, %vm163_vm11  ;;  %v4117_v45 = vpop.f32.mrf.mxu1  ;;  %vm4924_vm3 = vnez %v4923_v37  ;;  %v4950_v37 = vld [vmem:[#allocation27_spill] sm:$0xff] }
 0x260   :  { %v4727_v10 = vand.u32 4294901760, %v4047_v27  ;;  %v2483_v53 = vsel %vm4093_vm10, 1.0, %v4737_v3  ;;  %v4115_v22 = vpop.f32.mrf.mxu2 }
 0x261   :  { %988 = vmatmul.f32.gmra.mxu0 %v987_v38  ;;  %1573 = vmatmul.f32.vlgmr.msrb.gmra.mxu1 %v3405_v11  ;;  %v4105_v38 = vsub.f32 %v2483_v53, %v2483_v53 }
 0x263   :  { %1674 = vmatmul.f32.vlgmr.msrb.gmra.mxu2 %v1673_v4 }
 0x265   :  { %2510 = vmatmul.msk.f32.vlgmr.msrb.gmra.mxu3 %vm3947_vm13, %v4732_v7 }
 0x267   :  { %v4079_v12 = vpop.f32.mrf.mxu0 }
 0x268   :  { %v4141_v29 = vpop.f32.mrf.mxu2 }
 0x269   :  { %1476 = vmatmul.f32.vlgmr.msrb.gmra.mxu0 %v3405_v11  ;;  %1577 = vmatmul.f32.gmra.mxu1 %v3445_v51  ;;  %v1688_v11 = vsub.f32 %v4021_v17, %v4728_v14 }
 0x26b   :  { %1682 = vmatmul.f32.gmra.mxu2 %v1681_v5  ;;  %v1689_v58 = vand.u32 4294901760, %v1688_v11  ;;  %v4724_v5 = vand.u32 4294901760, %v4105_v38  ;;  %v4909_v11 = vld [vmem:[#allocation29_spill] sm:$0xff] }
 0x26c   :  { %vm165_vm6 = vcmp.eq.s32.totalorder %v4909_v11, %v2911_v30 }
 0x26d   :  { %2511 = vmatmul.msk.f32.gmra.mxu3 %vm2921_vm2, %v4732_v7  ;;  %vm4145_vm12 = vmor %vm101_vm9, %vm165_vm6 }
 0x26e   :  { %v4912_v39 = vsel %vm4145_vm12, 4294967295, %v4911_v39 }
 0x26f   :  { %v4107_v4 = vpop.f32.mrf.mxu0  ;;  %4913 = vst [vmem:[#allocation45_spill] sm:$0xff] %v4912_v39 }
 0x271   :  { %1480 = vmatmul.f32.gmra.mxu0 %v3445_v51  ;;  %1581 = vmatmul.f32.gmra.mxu1 %v3473_v46  ;;  %v1696_v51 = vsub.f32 %v4047_v27, %v4727_v10 }
 0x273   :  { %1690 = vmatmul.f32.gmra.mxu2 %v1689_v58  ;;  %v1697_v0 = vand.u32 4294901760, %v1696_v51  ;;  %v4143_v51 = vpop.f32.mrf.mxu1 }
 0x275   :  { %2512 = vmatmul.msk.f32.gmra.mxu3 %vm4003_vm1, %v4732_v7 }
 0x277   :  { %v4131_v58 = vpop.f32.mrf.mxu0 }
 0x279   :  { %1484 = vmatmul.f32.gmra.mxu0 %v3473_v46  ;;  %1585 = vmatmul.f32.gmra.mxu1 %v3499_v9  ;;  %v1704_v46 = vsub.f32 %v4077_v62, %v4725_v2 }
 0x27b   :  { %1698 = vmatmul.f32.gmra.mxu2 %v1697_v0  ;;  %v1705_v28 = vand.u32 4294901760, %v1704_v46  ;;  %v4149_v0 = vpop.f32.mrf.mxu3  ;;  %v4726_v46 = vand.u32 4294901760, %v4129_v57 }
 0x27d   :  { %2513 = vmatmul.msk.f32.gmra.mxu3 %vm4035_vm4, %v4732_v7 }
 0x27f   :  { %v4161_v32 = vpop.f32.mrf.mxu0 }
 0x281   :  { %1488 = vmatmul.f32.gmra.mxu0 %v3499_v9  ;;  %1589 = vmatmul.f32.gmra.mxu1 %v3519_v31  ;;  %v1712_v9 = vsub.f32 %v4105_v38, %v4724_v5  ;;  %v4171_v5 = vpop.f32.mrf.mxu2 }
 0x283   :  { %1706 = vmatmul.f32.gmra.mxu2 %v1705_v28  ;;  %v1713_v53 = vand.u32 4294901760, %v1712_v9  ;;  %v2485_v28 = vsel %vm4145_vm12, 1.0, %v4737_v3  ;;  %v4916_v9 = vld [vmem:[#allocation11_spill] sm:$0xff]  ;;  %v4179_v23 = vpop.f32.mrf.mxu3 }
 0x284   :  { %v4159_v11 = vsub.f32 %v2485_v28, %v2485_v28  ;;  %vm102_vm8 = vcmp.eq.s32.totalorder %v4916_v9, %v2911_v30  ;;  %v4917_v28 = vmov 0 }
 0x285   :  { %2514 = vmatmul.msk.f32.gmra.mxu3 %vm4063_vm15, %v4732_v7  ;;  %vm4175_vm0 = vmor %vm102_vm8, %vm166_vm14 }
 0x286   :  { %4915 = vst [vmem:[#allocation46_spill] sm:$0xff] %v4159_v11  ;;  %v4918_v28 = vsel %vm4175_vm0, 4294967295, %v4917_v28  ;;  %v2486_v9 = vsel %vm4175_vm0, 1.0, %v4737_v3 }
 0x287   :  { %4919 = vst [vmem:[#allocation48_spill] sm:$0xff] %v4918_v28  ;;  %v4187_v10 = vsub.f32 %v2486_v9, %v2486_v9  ;;  %v4189_v14 = vpop.f32.mrf.mxu0 }
 0x289   :  { %1492 = vmatmul.f32.gmra.mxu0 %v3519_v31  ;;  %1593 = vmatmul.f32.gmra.mxu1 %v3542_v19  ;;  %v1720_v31 = vsub.f32 %v4129_v57, %v4726_v46  ;;  %v4734_v46 = vand.u32 4294901760, %v4159_v11  ;;  %4920 = vst [vmem:[#allocation8_spill] sm:$0xff] %v4187_v10  ;;  %v4741_v9 = vand.u32 4294901760, %v4187_v10 }
 0x28b   :  { %1714 = vmatmul.f32.gmra.mxu2 %v1713_v53  ;;  %v4173_v53 = vpop.f32.mrf.mxu1  ;;  %v1721_v2 = vand.u32 4294901760, %v1720_v31  ;;  %v4197_v31 = vpop.f32.mrf.mxu2 }
 0x28c   :  { %v4201_v40 = vpop.f32.mrf.mxu3 }
 0x28d   :  { %2515 = vmatmul.msk.f32.gmra.mxu3 %vm4093_vm10, %v4732_v7  ;;  %4922 = vst [vmem:[#allocation41_spill] sm:$0xff] %v4201_v40  ;;  %v4928_v40 = vmov 1.0  }
 0x291   :  { %1496 = vmatmul.f32.gmra.mxu0 %v3542_v19  ;;  %1597 = vmatmul.f32.gmra.mxu1 %v3571_v18  ;;  %v1728_v19 = vsub.f32 %v4159_v11, %v4734_v46  ;;  %v4925_v46 = vld [vmem:[#allocation32_spill] sm:$0xff] }
 0x292   :  { %vm168_vm11 = vcmp.eq.s32.totalorder %v4925_v46, %v2911_v30 }
 0x293   :  { %1722 = vmatmul.f32.gmra.mxu2 %v1721_v2  ;;  %v4199_v44 = vpop.f32.mrf.mxu1  ;;  %v1729_v2 = vand.u32 4294901760, %v1728_v19  ;;  %v4929_v19 = vld [vmem:[#allocation19_spill] sm:$0xff] }
 0x294   :  { %4921 = vst [vmem:[#allocation38_spill] sm:$0xff] %v4199_v44  ;;  %v4213_v44 = vpop.f32.mrf.mxu0  ;;  %vm104_vm7 = vcmp.eq.s32.totalorder %v4929_v19, %v2911_v30  ;;  %v4231_v46 = vpop.f32.mrf.mxu3  ;;  %v4988_v1 = vld [vmem:[#allocation41_spill] sm:$0xff] }
 0x295   :  { %2516 = vmatmul.msk.f32.gmra.mxu3 %vm2941_vm5, %v4732_v7  ;;  %v2487_v7 = vsel %vm4924_vm3, 1.0, %v4737_v3  ;;  %4927 = vst [vmem:[#allocation36_spill] sm:$0xff] %v4213_v44  ;;  %v4223_v3 = vpop.f32.mrf.mxu2  ;;  %vm4227_vm6 = vmor %vm104_vm7, %vm168_vm11  ;;  %vm4951_vm11 = vnez %v4950_v37  ;;  %v4972_v37 = vld [vmem:[#allocation30_spill] sm:$0xff] }
 0x296   :  { %v4211_v11 = vsub.f32 %v2487_v7, %v2487_v7  ;;  %4930 = vst [vmem:[#allocation37_spill] sm:$0xff] %v4223_v3  ;;  %v4932_v7 = vmov 0 }
 0x297   :  { %v4933_v7 = vsel %vm4227_vm6, 4294967295, %v4932_v7  ;;  %4935 = vst [vmem:[#allocation39_spill] sm:$0xff] %v4231_v46 }
 0x298   :  { %4926 = vst [vmem:[#allocation40_spill] sm:$0xff] %v4211_v11 }
 0x299   :  { %1500 = vmatmul.f32.gmra.mxu0 %v3571_v18  ;;  %1601 = vmatmul.f32.gmra.mxu1 %v3603_v49  ;;  %v1736_v18 = vsub.f32 %v4187_v10, %v4741_v9  ;;  %4934 = vst [vmem:[#allocation44_spill] sm:$0xff] %v4933_v7  ;;  %v4746_v9 = vand.u32 4294901760, %v4211_v11  ;;  %v4936_v10 = vmov 0.0  }
 0x29a   :  { %v2488_v19 = vsel %vm4227_vm6, 1.0, %v4936_v10 }
 0x29b   :  { %1730 = vmatmul.f32.gmra.mxu2 %v1729_v2  ;;  %v4225_v2 = vpop.f32.mrf.mxu1  ;;  %v1737_v39 = vand.u32 4294901760, %v1736_v18  ;;  %v4241_v3 = vsub.f32 %v2488_v19, %v2488_v19  ;;  %v4939_v18 = vld [vmem:[#allocation12_spill] sm:$0xff] }
 0x29c   :  { %4931 = vst [vmem:[#allocation42_spill] sm:$0xff] %v4225_v2  ;;  %v4937_v2 = vld [vmem:[#allocation33_spill] sm:$0xff]  ;;  %v4243_v44 = vpop.f32.mrf.mxu0  ;;  %vm105_vm14 = vcmp.eq.s32.totalorder %v4939_v18, %v2911_v30  ;;  %v4261_v19 = vpop.f32.mrf.mxu3 }
 0x29d   :  { %2517 = vmatmul.msk.f32.gmra.mxu3 %vm4145_vm12, %v4928_v40  ;;  %vm169_vm9 = vcmp.eq.s32.totalorder %v4937_v2, %v2911_v30  ;;  %4938 = vst [vmem:[#allocation43_spill] sm:$0xff] %v4241_v3  ;;  %v4253_v46 = vpop.f32.mrf.mxu2  ;;  %v4942_v2 = vmov 0 }
 0x29e   :  { %4940 = vst [vmem:[#allocation14_spill] sm:$0xff] %v4253_v46  ;;  %vm4257_vm8 = vmor %vm105_vm14, %vm169_vm9 }
 0x29f   :  { %v4943_v2 = vsel %vm4257_vm8, 4294967295, %v4942_v2  ;;  %4945 = vst [vmem:[#allocation18_spill] sm:$0xff] %v4261_v19  ;;  %v2489_v18 = vsel %vm4257_vm8, 1.0, %v4936_v10 }
 0x2a0   :  { %4944 = vst [vmem:[#allocation47_spill] sm:$0xff] %v4943_v2 }
 0x2a1   :  { %1504 = vmatmul.f32.gmra.mxu0 %v3603_v49  ;;  %1605 = vmatmul.f32.gmra.mxu1 %v3622_v61  ;;  %v1744_v49 = vsub.f32 %v4211_v11, %v4746_v9  ;;  %v4750_v9 = vand.u32 4294901760, %v4241_v3  ;;  %v4269_v11 = vsub.f32 %v2489_v18, %v2489_v18 }
 0x2a3   :  { %1738 = vmatmul.f32.gmra.mxu2 %v1737_v39  ;;  %v4255_v39 = vpop.f32.mrf.mxu1  ;;  %v1745_v28 = vand.u32 4294901760, %v1744_v49  ;;  %4946 = vst [vmem:[#allocation26_spill] sm:$0xff] %v4269_v11  ;;  %v4755_v18 = vand.u32 4294901760, %v4269_v11 }
 0x2a4   :  { %4941 = vst [vmem:[#allocation23_spill] sm:$0xff] %v4255_v39  ;;  %v4271_v39 = vpop.f32.mrf.mxu0  ;;  %v4283_v46 = vpop.f32.mrf.mxu3 }
 0x2a5   :  { %2518 = vmatmul.msk.f32.gmra.mxu3 %vm4175_vm0, %v4928_v40  ;;  %4947 = vst [vmem:[#allocation13_spill] sm:$0xff] %v4271_v39  ;;  %v4279_v49 = vpop.f32.mrf.mxu2  ;;  %v2490_v39 = vsel %vm4951_vm11, 1.0, %v4936_v10 }
 0x2a6   :  { %4949 = vst [vmem:[#allocation16_spill] sm:$0xff] %v4283_v46 }
 0x2a9   :  { %1508 = vmatmul.f32.gmra.mxu0 %v3622_v61  ;;  %1609 = vmatmul.f32.gmra.mxu1 %v3662_v8  ;;  %v1752_v61 = vsub.f32 %v4241_v3, %v4750_v9  ;;  %v4952_v9 = vld [vmem:[#allocation34_spill] sm:$0xff]  ;;  %v4293_v3 = vsub.f32 %v2490_v39, %v2490_v39 }
 0x2aa   :  { %vm171_vm7 = vcmp.eq.s32.totalorder %v4952_v9, %v2911_v30 }
 0x2ab   :  { %1746 = vmatmul.f32.gmra.mxu2 %v1745_v28  ;;  %v4281_v19 = vpop.f32.mrf.mxu1  ;;  %v1753_v28 = vand.u32 4294901760, %v1752_v61  ;;  %4953 = vst [vmem:[#allocation20_spill] sm:$0xff] %v4293_v3  ;;  %v4954_v61 = vld [vmem:[#allocation21_spill] sm:$0xff] }
 0x2ac   :  { %4948 = vst [vmem:[#allocation25_spill] sm:$0xff] %v4281_v19  ;;  %v4295_v19 = vpop.f32.mrf.mxu0  ;;  %vm107_vm9 = vcmp.eq.s32.totalorder %v4954_v61, %v2911_v30  ;;  %v4313_v39 = vpop.f32.mrf.mxu3 }
 0x2ad   :  { %2519 = vmatmul.msk.f32.gmra.mxu3 %vm4924_vm3, %v4928_v40  ;;  %v4305_v46 = vpop.f32.mrf.mxu2  ;;  %vm4309_vm14 = vmor %vm107_vm9, %vm171_vm7  ;;  %4959 = vst [vmem:[#allocation10_spill] sm:$0xff] %v4313_v39 }
 0x2ae   :  { %4955 = vst [vmem:[#allocation9_spill] sm:$0xff] %v4305_v46  ;;  %v2491_v61 = vsel %vm4309_vm14, 1.0, %v4936_v10 }
 0x2b1   :  { %1512 = vmatmul.f32.gmra.mxu0 %v3662_v8  ;;  %1613 = vmatmul.f32.gmra.mxu1 %v3717_v41  ;;  %v1760_v8 = vsub.f32 %v4269_v11, %v4755_v18  ;;  %v4762_v18 = vand.u32 4294901760, %v4293_v3  ;;  %v4960_v11 = vld [vmem:[#allocation35_spill] sm:$0xff] }
 0x2b2   :  { %vm172_vm7 = vcmp.eq.s32.totalorder %v4960_v11, %v2911_v30  ;;  %v4965_v11 = vmov 0 }
 0x2b3   :  { %1754 = vmatmul.f32.gmra.mxu2 %v1753_v28  ;;  %v4307_v28 = vpop.f32.mrf.mxu1  ;;  %v1761_v7 = vand.u32 4294901760, %v1760_v8  ;;  %v4962_v8 = vld [vmem:[#allocation15_spill] sm:$0xff] }
 0x2b4   :  { %4956 = vst [vmem:[#allocation28_spill] sm:$0xff] %v4307_v28  ;;  %v4323_v28 = vsub.f32 %v2491_v61, %v2491_v61  ;;  %v4325_v46 = vpop.f32.mrf.mxu0  ;;  %vm108_vm9 = vcmp.eq.s32.totalorder %v4962_v8, %v2911_v30  ;;  %v4343_v61 = vpop.f32.mrf.mxu3 }
 0x2b5   :  { %2520 = vmatmul.msk.f32.gmra.mxu3 %vm4227_vm6, %v4928_v40  ;;  %v4335_v39 = vpop.f32.mrf.mxu2  ;;  %vm4339_vm6 = vmor %vm108_vm9, %vm172_vm7  ;;  %4968 = vst [vmem:[#allocation32_spill] sm:$0xff] %v4343_v61  ;;  %vm4973_vm7 = vnez %v4972_v37 }
 0x2b6   :  { %4961 = vst [vmem:[#allocation29_spill] sm:$0xff] %v4323_v28  ;;  %v4966_v11 = vsel %vm4339_vm6, 4294967295, %v4965_v11  ;;  %v2492_v30 = vsel %vm4339_vm6, 1.0, %v4936_v10 }
 0x2b7   :  { %4963 = vst [vmem:[#allocation17_spill] sm:$0xff] %v4335_v39  ;;  %v4351_v8 = vsub.f32 %v2492_v30, %v2492_v30 }
 0x2b8   :  { %4967 = vst [vmem:[#allocation11_spill] sm:$0xff] %v4966_v11 }
 0x2b9   :  { %1516 = vmatmul.f32.gmra.mxu0 %v3717_v41  ;;  %1617 = vmatmul.f32.gmra.mxu1 %v3758_v33  ;;  %v1768_v41 = vsub.f32 %v4293_v3, %v4762_v18  ;;  %v4766_v18 = vand.u32 4294901760, %v4323_v28  ;;  %4969 = vst [vmem:[#allocation19_spill] sm:$0xff] %v4351_v8  ;;  %v4769_v30 = vand.u32 4294901760, %v4351_v8 }
 0x2bb   :  { %1762 = vmatmul.f32.gmra.mxu2 %v1761_v7  ;;  %v4337_v7 = vpop.f32.mrf.mxu1  ;;  %v1769_v2 = vand.u32 4294901760, %v1768_v41 }
 0x2bc   :  { %4964 = vst [vmem:[#allocation31_spill] sm:$0xff] %v4337_v7  ;;  %v4353_v3 = vpop.f32.mrf.mxu0  ;;  %v4365_v61 = vpop.f32.mrf.mxu3 }
 0x2bd   :  { %2521 = vmatmul.msk.f32.gmra.mxu3 %vm4257_vm8, %v4928_v40  ;;  %4970 = vst [vmem:[#allocation33_spill] sm:$0xff] %v4353_v3  ;;  %v4361_v41 = vpop.f32.mrf.mxu2  ;;  %v2493_v3 = vsel %vm4973_vm7, 1.0, %v4936_v10 }
 0x2be   :  { %v4373_v39 = vsub.f32 %v2493_v3, %v2493_v3 }
 0x2c0   :  { %4974 = vst [vmem:[#allocation34_spill] sm:$0xff] %v4373_v39  ;;  %v4774_v10 = vand.u32 4294901760, %v4373_v39 }
 0x2c1   :  { %1520 = vmatmul.f32.gmra.mxu0 %v3758_v33  ;;  %1621 = vmatmul.f32.gmra.mxu1 %v3811_v13  ;;  %v1776_v33 = vsub.f32 %v4323_v28, %v4766_v18 }
 0x2c3   :  { %1770 = vmatmul.f32.gmra.mxu2 %v1769_v2  ;;  %v4363_v7 = vpop.f32.mrf.mxu1  ;;  %v1777_v2 = vand.u32 4294901760, %v1776_v33 }
 0x2c4   :  { %4971 = vst [vmem:[#allocation12_spill] sm:$0xff] %v4363_v7  ;;  %v4375_v18 = vpop.f32.mrf.mxu0  ;;  %v4387_v7 = vpop.f32.mrf.mxu3 }
 0x2c5   :  { %2522 = vmatmul.msk.f32.gmra.mxu3 %vm4951_vm11, %v4928_v40  ;;  %v4383_v33 = vpop.f32.mrf.mxu2  ;;  %4976 = vst [vmem:[#allocation35_spill] sm:$0xff] %v4387_v7 }
 0x2c9   :  { %1524 = vmatmul.f32.gmra.mxu0 %v3811_v13  ;;  %1625 = vmatmul.f32.gmra.mxu1 %v3851_v20  ;;  %v1784_v13 = vsub.f32 %v4351_v8, %v4769_v30  ;;  %v1792_v30 = vsub.f32 %v4373_v39, %v4774_v10 }
 0x2cb   :  { %1778 = vmatmul.f32.gmra.mxu2 %v1777_v2  ;;  %v4385_v28 = vpop.f32.mrf.mxu1  ;;  %v1785_v3 = vand.u32 4294901760, %v1784_v13  ;;  %v1793_v13 = vand.u32 4294901760, %v1792_v30 }
 0x2cc   :  { %4975 = vst [vmem:[#allocation21_spill] sm:$0xff] %v4385_v28  ;;  %v4392_v2 = vpop.f32.mrf.mxu0 }
 0x2cd   :  { %2523 = vmatmul.msk.f32.gmra.mxu3 %vm4309_vm14, %v4928_v40  ;;  %4977 = vst [vmem:[#allocation15_spill] sm:$0xff] %v4392_v2  ;;  %v4400_v8 = vpop.f32.mrf.mxu2 }
 0x2ce   :  { %4978 = vst [vmem:[#allocation30_spill] sm:$0xff] %v4400_v8 }
 0x2d1   :  { %1528 = vmatmul.f32.gmra.mxu0 %v3851_v20  ;;  %1629 = vmatmul.f32.gmra.mxu1 %v3910_v50  ;;  %v4402_v20 = vpop.f32.mrf.mxu3 }
 0x2d2   :  { %4979 = vst [vmem:[#allocation49_spill] sm:$0xff] %v4402_v20 }
 0x2d3   :  { %1786 = vmatmul.f32.gmra.mxu2 %v1785_v3  ;;  %v1091_v3 = vadd.f32 %v3990_v56, %v4014_v54  ;;  %v1095_v54 = vadd.f32 %v4031_v35, %v4049_v26  ;;  %v1099_v35 = vadd.f32 %v4061_v52, %v4079_v12  ;;  %v1103_v12 = vadd.f32 %v4091_v43, %v4107_v4 }
 0x2d4   :  { %v1107_v4 = vadd.f32 %v4117_v45, %v4131_v58  ;;  %v1111_v58 = vadd.f32 %v4143_v51, %v4161_v32  ;;  %v1115_v32 = vadd.f32 %v4173_v53, %v4189_v14 }
 0x2d5   :  { %2524 = vmatmul.msk.f32.gmra.mxu3 %vm4339_vm6, %v4928_v40  ;;  %v1205_v20 = vadd.f32 %v4018_v6, %v1091_v3  ;;  %v1215_v3 = vadd.f32 %v4089_v15, %v1099_v35 }
 0x2d6   :  { %v1150_v28 = vpop.f32.mrf.mxu1 }
 0x2d7   :  { %v1319_v56 = vadd.f32 %v4033_v59, %v1205_v20  ;;  %v1331_v21 = vadd.f32 %v4097_v55, %v1215_v3  ;;  %v4983_v55 = vand.u32 4294901760, %v4047_v27 }
 0x2d9   :  { %1532 = vmatmul.f32.gmra.mxu0 %v3910_v50  ;;  %1633 = vmatmul.f32.gmra.mxu1 %v3975_v34  ;;  %v4980_v50 = vand.u32 4294901760, %v3966_v25  ;;  %v5036_v9 = vld [vmem:[#allocation49_spill] sm:$0xff] }
 0x2db   :  { %1794 = vmatmul.f32.gmra.mxu2 %v1793_v13 }
 0x2dd   :  { %2525 = vmatmul.msk.f32.gmra.mxu3 %vm4973_vm7, %v4928_v40 }
 0x2de   :  { %v989_v11 = vpop.f32.mrf.mxu0  ;;  %v1279_v10 = vpop.f32.mrf.mxu2 }
 0x2df   :  { %v1151_v39 = vadd.f32 %v1150_v28, %v989_v11  ;;  %v1574_v8 = vpop.f32.mrf.mxu1 }
 0x2e0   :  { %v1408_v2 = vpop.f32.mrf.mxu3 }
 0x2e1   :  { %v1280_v7 = vadd.f32 %v1279_v10, %v1151_v39  ;;  %1536 = vmatmul.f32.gmra.mxu0 %v3975_v34  ;;  %2123 = vmatmul.f32.vlgmr.msra.gmra.mxu1 %v4980_v50 }
 0x2e3   :  { %v4415_v30 = vadd.f32 %v1408_v2, %v1280_v7  ;;  %2526 = vmatmul.msk.f32.vlgmr.msra.gmra.mxu2 %vm3947_vm13, %v4928_v40  ;;  %v1210_v7 = vadd.f32 %v4059_v63, %v1095_v54  ;;  %v4981_v2 = vand.u32 4294901760, %v3995_v42 }
 0x2e5   :  { %2542 = vmatmul.msk.f32.vlgmr.msra.gmra.mxu3 %vm3947_vm13, %v4928_v40  ;;  %v1325_v48 = vadd.f32 %v4067_v47, %v1210_v7  ;;  %v4982_v47 = vand.u32 4294901760, %v4021_v17 }
 0x2e6   :  { %v1477_v6 = vpop.f32.mrf.mxu0  ;;  %v1675_v34 = vpop.f32.mrf.mxu2 }
 0x2e7   :  { %v1478_v28 = vadd.f32 %v1477_v6, %v1319_v56  ;;  %v1578_v39 = vpop.f32.mrf.mxu1 }
 0x2e8   :  { %v1896_v11 = vpop.f32.mrf.mxu3 }
 0x2e9   :  { %v1575_v10 = vadd.f32 %v1574_v8, %v1478_v28  ;;  %2009 = vmatmul.f32.vlgmr.msra.gmra.mxu0 %v3966_v25  ;;  %2129 = vmatmul.f32.gmra.mxu1 %v4981_v2  ;;  %v1220_v28 = vadd.f32 %v4115_v22, %v1103_v12 }
 0x2eb   :  { %v1676_v59 = vadd.f32 %v1675_v34, %v1575_v10  ;;  %2527 = vmatmul.msk.f32.gmra.mxu2 %vm2921_vm2, %v4928_v40  ;;  %v1337_v24 = vadd.f32 %v4119_v36, %v1220_v28  ;;  %v4984_v36 = vand.u32 4294901760, %v4077_v62 }
 0x2ed   :  { %v4436_v26 = vadd.f32 %v1896_v11, %v1676_v59  ;;  %2543 = vmatmul.msk.f32.gmra.mxu3 %vm2921_vm2, %v4928_v40  ;;  %v1225_v59 = vadd.f32 %v4141_v29, %v1107_v4 }
 0x2ee   :  { %v1481_v25 = vpop.f32.mrf.mxu0  ;;  %v1683_v63 = vpop.f32.mrf.mxu2 }
 0x2ef   :  { %v1482_v8 = vadd.f32 %v1481_v25, %v1325_v48  ;;  %v1582_v20 = vpop.f32.mrf.mxu1  ;;  %v1343_v16 = vadd.f32 %v4149_v0, %v1225_v59  ;;  %v4985_v0 = vand.u32 4294901760, %v4105_v38 }
 0x2f0   :  { %v1900_v13 = vpop.f32.mrf.mxu3 }
 0x2f1   :  { %v1579_v50 = vadd.f32 %v1578_v39, %v1482_v8  ;;  %2014 = vmatmul.f32.gmra.mxu0 %v3995_v42  ;;  %2135 = vmatmul.f32.gmra.mxu1 %v4982_v47 }
 0x2f3   :  { %v1684_v52 = vadd.f32 %v1683_v63, %v1579_v50  ;;  %2528 = vmatmul.msk.f32.gmra.mxu2 %vm4003_vm1, %v4928_v40 }
 0x2f5   :  { %v4451_v56 = vadd.f32 %v1900_v13, %v1684_v52  ;;  %2544 = vmatmul.msk.f32.gmra.mxu3 %vm4003_vm1, %v4928_v40 }
 0x2f6   :  { %v1485_v42 = vpop.f32.mrf.mxu0  ;;  %v1691_v15 = vpop.f32.mrf.mxu2 }
 0x2f7   :  { %v1486_v54 = vadd.f32 %v1485_v42, %v1331_v21  ;;  %v1586_v6 = vpop.f32.mrf.mxu1  ;;  %v1235_v21 = vadd.f32 %v4197_v31, %v1115_v32  ;;  %v5002_v32 = vld [vmem:[#allocation13_spill] sm:$0xff] }
 0x2f8   :  { %v1904_v34 = vpop.f32.mrf.mxu3 }
 0x2f9   :  { %v1583_v39 = vadd.f32 %v1582_v20, %v1486_v54  ;;  %2019 = vmatmul.f32.gmra.mxu0 %v4021_v17  ;;  %2141 = vmatmul.f32.gmra.mxu1 %v4983_v55  ;;  %v1230_v20 = vadd.f32 %v4171_v5, %v1111_v58  ;;  %v1355_v42 = vadd.f32 %v4988_v1, %v1235_v21  ;;  %v4990_v54 = vld [vmem:[#allocation38_spill] sm:$0xff]  ;;  %v5004_v1 = vld [vmem:[#allocation40_spill] sm:$0xff] }
 0x2fb   :  { %v1692_v43 = vadd.f32 %v1691_v15, %v1583_v39  ;;  %2529 = vmatmul.msk.f32.gmra.mxu2 %vm4035_vm4, %v4928_v40  ;;  %v1349_v60 = vadd.f32 %v4179_v23, %v1230_v20  ;;  %v4986_v23 = vand.u32 4294901760, %v4129_v57  ;;  %v4989_v15 = vld [vmem:[#allocation36_spill] sm:$0xff] }
 0x2fc   :  { %v4998_v20 = vld [vmem:[#allocation8_spill] sm:$0xff] }
 0x2fd   :  { %v4466_v11 = vadd.f32 %v1904_v34, %v1692_v43  ;;  %2545 = vmatmul.msk.f32.gmra.mxu3 %vm4035_vm4, %v4928_v40  ;;  %v4991_v43 = vld [vmem:[#allocation37_spill] sm:$0xff] }
 0x2fe   :  { %v1489_v17 = vpop.f32.mrf.mxu0  ;;  %v1699_v22 = vpop.f32.mrf.mxu2 }
 0x2ff   :  { %v1490_v7 = vadd.f32 %v1489_v17, %v1337_v24  ;;  %v1590_v10 = vpop.f32.mrf.mxu1  ;;  %v4992_v17 = vld [vmem:[#allocation46_spill] sm:$0xff] }
 0x300   :  { %v1908_v2 = vpop.f32.mrf.mxu3 }
 0x301   :  { %v1587_v48 = vadd.f32 %v1586_v6, %v1490_v7  ;;  %2024 = vmatmul.f32.gmra.mxu0 %v4047_v27  ;;  %2147 = vmatmul.f32.gmra.mxu1 %v4984_v36  ;;  %v1119_v6 = vadd.f32 %v4990_v54, %v4989_v15  ;;  %v5023_v54 = vld [vmem:[#allocation20_spill] sm:$0xff] }
 0x303   :  { %v1700_v45 = vadd.f32 %v1699_v22, %v1587_v48  ;;  %2530 = vmatmul.msk.f32.gmra.mxu2 %vm4063_vm15, %v4928_v40  ;;  %v1240_v24 = vadd.f32 %v4991_v43, %v1119_v6  ;;  %v4993_v22 = vand.u32 4294901760, %v4992_v17  ;;  %v4996_v48 = vld [vmem:[#allocation42_spill] sm:$0xff]  ;;  %v5007_v6 = vld [vmem:[#allocation16_spill] sm:$0xff] }
 0x304   :  { %v1123_v36 = vadd.f32 %v4996_v48, %v4243_v44  ;;  %v5014_v48 = vld [vmem:[#allocation10_spill] sm:$0xff] }
 0x305   :  { %v4481_v35 = vadd.f32 %v1908_v2, %v1700_v45  ;;  %2546 = vmatmul.msk.f32.gmra.mxu3 %vm4063_vm15, %v4928_v40  ;;  %v4995_v2 = vld [vmem:[#allocation39_spill] sm:$0xff] }
 0x306   :  { %v1493_v27 = vpop.f32.mrf.mxu0  ;;  %v1707_v29 = vpop.f32.mrf.mxu2  ;;  %v1361_v59 = vadd.f32 %v4995_v2, %v1240_v24 }
 0x307   :  { %v1494_v25 = vadd.f32 %v1493_v27, %v1343_v16  ;;  %v1594_v63 = vpop.f32.mrf.mxu1 }
 0x308   :  { %v1912_v8 = vpop.f32.mrf.mxu3 }
 0x309   :  { %v1591_v13 = vadd.f32 %v1590_v10, %v1494_v25  ;;  %2029 = vmatmul.f32.gmra.mxu0 %v4077_v62  ;;  %2153 = vmatmul.f32.gmra.mxu1 %v4985_v0  ;;  %v4997_v25 = vld [vmem:[#allocation14_spill] sm:$0xff]  ;;  %v5010_v10 = vld [vmem:[#allocation43_spill] sm:$0xff] }
 0x30a   :  { %v5011_v2 = vand.u32 4294901760, %v5010_v10  ;;  %v5017_v0 = vld [vmem:[#allocation26_spill] sm:$0xff] }
 0x30b   :  { %v1708_v51 = vadd.f32 %v1707_v29, %v1591_v13  ;;  %2531 = vmatmul.msk.f32.gmra.mxu2 %vm4093_vm10, %v4928_v40  ;;  %v4999_v13 = vand.u32 4294901760, %v4998_v20 }
 0x30d   :  { %v4496_v3 = vadd.f32 %v1912_v8, %v1708_v51  ;;  %2547 = vmatmul.msk.f32.gmra.mxu3 %vm4093_vm10, %v4928_v40  ;;  %v5001_v51 = vld [vmem:[#allocation18_spill] sm:$0xff] }
 0x30e   :  { %v1497_v62 = vpop.f32.mrf.mxu0  ;;  %v1715_v5 = vpop.f32.mrf.mxu2 }
 0x30f   :  { %v1498_v50 = vadd.f32 %v1497_v62, %v1349_v60  ;;  %v1598_v47 = vpop.f32.mrf.mxu1  ;;  %v5003_v62 = vld [vmem:[#allocation23_spill] sm:$0xff] }
 0x310   :  { %v1916_v52 = vpop.f32.mrf.mxu3 }
 0x311   :  { %v1595_v12 = vadd.f32 %v1594_v63, %v1498_v50  ;;  %2034 = vmatmul.f32.gmra.mxu0 %v4105_v38  ;;  %2159 = vmatmul.f32.gmra.mxu1 %v4986_v23  ;;  %v1245_v63 = vadd.f32 %v4997_v25, %v1123_v36 }
 0x313   :  { %v1716_v14 = vadd.f32 %v1715_v5, %v1595_v12  ;;  %2532 = vmatmul.msk.f32.gmra.mxu2 %vm2941_vm5, %v4928_v40  ;;  %v1367_v60 = vadd.f32 %v5001_v51, %v1245_v63  ;;  %v1127_v5 = vadd.f32 %v5003_v62, %v5002_v32  ;;  %v5018_v51 = vand.u32 4294901760, %v5017_v0  ;;  %v5020_v32 = vld [vmem:[#allocation32_spill] sm:$0xff] }
 0x315   :  { %v4511_v34 = vadd.f32 %v1916_v52, %v1716_v14  ;;  %2548 = vmatmul.msk.f32.gmra.mxu3 %vm2941_vm5, %v4928_v40  ;;  %v1250_v14 = vadd.f32 %v4279_v49, %v1127_v5  ;;  %v5021_v5 = vld [vmem:[#allocation33_spill] sm:$0xff] }
 0x316   :  { %v1501_v38 = vpop.f32.mrf.mxu0  ;;  %v1723_v31 = vpop.f32.mrf.mxu2 }
 0x317   :  { %v1502_v28 = vadd.f32 %v1501_v38, %v1355_v42  ;;  %v1602_v39 = vpop.f32.mrf.mxu1  ;;  %v5005_v42 = vand.u32 4294901760, %v5004_v1  ;;  %v1373_v38 = vadd.f32 %v5007_v6, %v1250_v14  ;;  %v5024_v6 = vand.u32 4294901760, %v5023_v54 }
 0x318   :  { %v1920_v55 = vpop.f32.mrf.mxu3 }
 0x319   :  { %v1599_v4 = vadd.f32 %v1598_v47, %v1502_v28  ;;  %2039 = vmatmul.f32.gmra.mxu0 %v4129_v57  ;;  %2165 = vmatmul.f32.gmra.mxu1 %v4993_v22 }
 0x31b   :  { %v1724_v7 = vadd.f32 %v1723_v31, %v1599_v4  ;;  %2533 = vmatmul.msk.f32.gmra.mxu2 %vm4145_vm12, %v4928_v40  ;;  %v5008_v31 = vld [vmem:[#allocation25_spill] sm:$0xff] }
 0x31c   :  { %v1131_v28 = vadd.f32 %v5008_v31, %v4295_v19 }
 0x31d   :  { %v4526_v45 = vadd.f32 %v1920_v55, %v1724_v7  ;;  %2549 = vmatmul.msk.f32.gmra.mxu3 %vm4145_vm12, %v4928_v40 }
 0x31e   :  { %v1505_v57 = vpop.f32.mrf.mxu0  ;;  %v1731_v16 = vpop.f32.mrf.mxu2 }
 0x31f   :  { %v1506_v58 = vadd.f32 %v1505_v57, %v1361_v59  ;;  %v1606_v27 = vpop.f32.mrf.mxu1  ;;  %v5012_v59 = vld [vmem:[#allocation44_spill] sm:$0xff] }
 0x320   :  { %v1924_v29 = vpop.f32.mrf.mxu3  ;;  %vm5013_vm2 = vnez %v5012_v59  ;;  %v5015_v57 = vld [vmem:[#allocation28_spill] sm:$0xff] }
 0x321   :  { %v1603_v8 = vadd.f32 %v1602_v39, %v1506_v58  ;;  %2044 = vmatmul.f32.gmra.mxu0 %v4992_v17  ;;  %2171 = vmatmul.f32.gmra.mxu1 %v4999_v13  ;;  %v5009_v17 = vld [vmem:[#allocation9_spill] sm:$0xff] }
 0x322   :  { %v1255_v22 = vadd.f32 %v5009_v17, %v1131_v28 }
 0x323   :  { %v1732_v44 = vadd.f32 %v1731_v16, %v1603_v8  ;;  %2534 = vmatmul.msk.f32.gmra.mxu2 %vm4175_vm0, %v4928_v40  ;;  %v1135_v16 = vadd.f32 %v5015_v57, %v4325_v46 }
 0x324   :  { %v1379_v36 = vadd.f32 %v5014_v48, %v1255_v22  ;;  %v5030_v48 = vld [vmem:[#allocation15_spill] sm:$0xff] }
 0x325   :  { %v4541_v50 = vadd.f32 %v1924_v29, %v1732_v44  ;;  %2550 = vmatmul.msk.f32.gmra.mxu3 %vm4175_vm0, %v4928_v40 }
 0x326   :  { %v1509_v47 = vpop.f32.mrf.mxu0  ;;  %v1739_v52 = vpop.f32.mrf.mxu2 }
 0x327   :  { %v1510_v21 = vadd.f32 %v1509_v47, %v1367_v60  ;;  %v1610_v12 = vpop.f32.mrf.mxu1  ;;  %v5022_v47 = vld [vmem:[#allocation31_spill] sm:$0xff] }
 0x328   :  { %v1928_v23 = vpop.f32.mrf.mxu3 }
 0x329   :  { %v1607_v53 = vadd.f32 %v1606_v27, %v1510_v21  ;;  %2049 = vmatmul.f32.gmra.mxu0 %v4998_v20  ;;  %2177 = vmatmul.f32.gmra.mxu1 %v5005_v42  ;;  %v5016_v20 = vld [vmem:[#allocation17_spill] sm:$0xff] }
 0x32a   :  { %v1260_v13 = vadd.f32 %v5016_v20, %v1135_v16 }
 0x32b   :  { %v1740_v15 = vadd.f32 %v1739_v52, %v1607_v53  ;;  %2535 = vmatmul.msk.f32.gmra.mxu2 %vm4924_vm3, %v4928_v40  ;;  %v1139_v52 = vadd.f32 %v5022_v47, %v5021_v5 }
 0x32c   :  { %v1385_v62 = vadd.f32 %v5020_v32, %v1260_v13 }
 0x32d   :  { %v4556_v39 = vadd.f32 %v1928_v23, %v1740_v15  ;;  %2551 = vmatmul.msk.f32.gmra.mxu3 %vm4924_vm3, %v4928_v40  ;;  %v1265_v42 = vadd.f32 %v4361_v41, %v1139_v52 }
 0x32e   :  { %v1513_v49 = vpop.f32.mrf.mxu0  ;;  %v1747_v55 = vpop.f32.mrf.mxu2 }
 0x32f   :  { %v1514_v43 = vadd.f32 %v1513_v49, %v1373_v38  ;;  %v1614_v24 = vpop.f32.mrf.mxu1  ;;  %v1391_v28 = vadd.f32 %v4365_v61, %v1265_v42  ;;  %v5026_v49 = vld [vmem:[#allocation12_spill] sm:$0xff]  ;;  %v5027_v61 = vld [vmem:[#allocation29_spill] sm:$0xff] }
 0x330   :  { %v1932_v4 = vpop.f32.mrf.mxu3 }
 0x331   :  { %v1611_v7 = vadd.f32 %v1610_v12, %v1514_v43  ;;  %2054 = vmatmul.f32.gmra.mxu0 %v5004_v1  ;;  %2183 = vmatmul.f32.gmra.mxu1 %v5011_v2  ;;  %v5028_v2 = vand.u32 4294901760, %v5027_v61 }
 0x333   :  { %v1748_v19 = vadd.f32 %v1747_v55, %v1611_v7  ;;  %2536 = vmatmul.msk.f32.gmra.mxu2 %vm5013_vm2, %v4928_v40  ;;  %v1143_v55 = vadd.f32 %v5026_v49, %v4375_v18 }
 0x335   :  { %v4571_v58 = vadd.f32 %v1932_v4, %v1748_v19  ;;  %2552 = vmatmul.msk.f32.gmra.mxu3 %vm5013_vm2, %v4928_v40  ;;  %v1270_v7 = vadd.f32 %v4383_v33, %v1143_v55  ;;  %v5029_v19 = vld [vmem:[#allocation35_spill] sm:$0xff] }
 0x336   :  { %v1517_v27 = vpop.f32.mrf.mxu0  ;;  %v1755_v29 = vpop.f32.mrf.mxu2 }
 0x337   :  { %v1518_v25 = vadd.f32 %v1517_v27, %v1379_v36  ;;  %v1618_v63 = vpop.f32.mrf.mxu1  ;;  %v1397_v59 = vadd.f32 %v5029_v19, %v1270_v7  ;;  %v5031_v36 = vld [vmem:[#allocation21_spill] sm:$0xff] }
 0x338   :  { %v1936_v8 = vpop.f32.mrf.mxu3  ;;  %v1147_v57 = vadd.f32 %v5031_v36, %v5030_v48 }
 0x339   :  { %v1615_v44 = vadd.f32 %v1614_v24, %v1518_v25  ;;  %2059 = vmatmul.f32.gmra.mxu0 %v5010_v10  ;;  %2189 = vmatmul.f32.gmra.mxu1 %v5018_v51 }
 0x33b   :  { %v1756_v46 = vadd.f32 %v1755_v29, %v1615_v44  ;;  %2537 = vmatmul.msk.f32.gmra.mxu2 %vm4257_vm8, %v4928_v40  ;;  %v5033_v44 = vld [vmem:[#allocation19_spill] sm:$0xff] }
 0x33d   :  { %v4586_v21 = vadd.f32 %v1936_v8, %v1756_v46  ;;  %2553 = vmatmul.msk.f32.gmra.mxu3 %vm4257_vm8, %v4928_v40  ;;  %v5032_v8 = vld [vmem:[#allocation30_spill] sm:$0xff] }
 0x33e   :  { %v1521_v12 = vpop.f32.mrf.mxu0  ;;  %v1763_v23 = vpop.f32.mrf.mxu2  ;;  %v1275_v20 = vadd.f32 %v5032_v8, %v1147_v57 }
 0x33f   :  { %v1522_v14 = vadd.f32 %v1521_v12, %v1385_v62  ;;  %v1622_v53 = vpop.f32.mrf.mxu1 }
 0x340   :  { %v1940_v1 = vpop.f32.mrf.mxu3  ;;  %v1403_v60 = vadd.f32 %v5036_v9, %v1275_v20 }
 0x341   :  { %v1619_v15 = vadd.f32 %v1618_v63, %v1522_v14  ;;  %2064 = vmatmul.f32.gmra.mxu0 %v5017_v0  ;;  %2195 = vmatmul.f32.gmra.mxu1 %v5024_v6  ;;  %v5034_v0 = vand.u32 4294901760, %v5033_v44  ;;  %v5037_v14 = vld [vmem:[#allocation34_spill] sm:$0xff] }
 0x343   :  { %v1764_v38 = vadd.f32 %v1763_v23, %v1619_v15  ;;  %2538 = vmatmul.msk.f32.gmra.mxu2 %vm4951_vm11, %v4928_v40 }
 0x345   :  { %v4601_v43 = vadd.f32 %v1940_v1, %v1764_v38  ;;  %2554 = vmatmul.msk.f32.gmra.mxu3 %vm4951_vm11, %v4928_v40 }
 0x346   :  { %v1525_v41 = vpop.f32.mrf.mxu0  ;;  %v1771_v24 = vpop.f32.mrf.mxu2 }
 0x347   :  { %v1526_v4 = vadd.f32 %v1525_v41, %v1391_v28  ;;  %v1626_v17 = vpop.f32.mrf.mxu1 }
 0x348   :  { %v1944_v22 = vpop.f32.mrf.mxu3 }
 0x349   :  { %v1623_v10 = vadd.f32 %v1622_v53, %v1526_v4  ;;  %2069 = vmatmul.f32.gmra.mxu0 %v5023_v54  ;;  %2201 = vmatmul.f32.gmra.mxu1 %v5028_v2  ;;  %v5038_v53 = vand.u32 4294901760, %v5037_v14 }
 0x34b   :  { %v1772_v18 = vadd.f32 %v1771_v24, %v1623_v10  ;;  %2539 = vmatmul.msk.f32.gmra.mxu2 %vm4309_vm14, %v4928_v40 }
 0x34d   :  { %v4616_v16 = vadd.f32 %v1944_v22, %v1772_v18  ;;  %2555 = vmatmul.msk.f32.gmra.mxu3 %vm4309_vm14, %v4928_v40 }
 0x34e   :  { %v1529_v33 = vpop.f32.mrf.mxu0  ;;  %v1779_v27 = vpop.f32.mrf.mxu2 }
 0x34f   :  { %v1530_v29 = vadd.f32 %v1529_v33, %v1397_v59  ;;  %v1630_v25 = vpop.f32.mrf.mxu1 }
 0x350   :  { %v1948_v63 = vpop.f32.mrf.mxu3 }
 0x351   :  { %v1627_v13 = vadd.f32 %v1626_v17, %v1530_v29  ;;  %2074 = vmatmul.f32.gmra.mxu0 %v5027_v61  ;;  %2207 = vmatmul.f32.gmra.mxu1 %v5034_v0 }
 0x353   :  { %v1780_v51 = vadd.f32 %v1779_v27, %v1627_v13  ;;  %2540 = vmatmul.msk.f32.gmra.mxu2 %vm4339_vm6, %v4928_v40 }
 0x355   :  { %v4629_v32 = vadd.f32 %v1948_v63, %v1780_v51  ;;  %2556 = vmatmul.msk.f32.gmra.mxu3 %vm4339_vm6, %v4928_v40 }
 0x356   :  { %v1533_v62 = vpop.f32.mrf.mxu0  ;;  %v1787_v5 = vpop.f32.mrf.mxu2 }
 0x357   :  { %v1534_v47 = vadd.f32 %v1533_v62, %v1403_v60  ;;  %v1634_v52 = vpop.f32.mrf.mxu1 }
 0x358   :  { %v1952_v12 = vpop.f32.mrf.mxu3 }
 0x359   :  { %v1631_v23 = vadd.f32 %v1630_v25, %v1534_v47  ;;  %2079 = vmatmul.f32.gmra.mxu0 %v5033_v44  ;;  %2213 = vmatmul.f32.gmra.mxu1 %v5038_v53 }
 0x35b   :  { %v1788_v1 = vadd.f32 %v1787_v5, %v1631_v23  ;;  %2541 = vmatmul.msk.f32.gmra.mxu2 %vm4973_vm7, %v4928_v40 }
 0x35d   :  { %v4640_v42 = vadd.f32 %v1952_v12, %v1788_v1  ;;  %2557 = vmatmul.msk.f32.gmra.mxu3 %vm4973_vm7, %v4928_v40 }
 0x35e   :  { %v1537_v15 = vpop.f32.mrf.mxu0  ;;  %v1795_v54 = vpop.f32.mrf.mxu2 }
 0x35f   :  { %v1538_v6 = vadd.f32 %v1537_v15, %v4415_v30  ;;  %v2124_v38 = vpop.f32.mrf.mxu1 }
 0x360   :  { %v1956_v31 = vpop.f32.mrf.mxu3 }
 0x361   :  { %v1635_v28 = vadd.f32 %v1634_v52, %v1538_v6  ;;  %2084 = vmatmul.f32.gmra.mxu0 %v5037_v14 }
 0x363   :  { %v1796_v49 = vadd.f32 %v1795_v54, %v1635_v28 }
 0x365   :  { %v4647_v55 = vadd.f32 %v1956_v31, %v1796_v49 }
 0x366   :  { %v2010_v41 = vpop.f32.mrf.mxu0  ;;  %v2283_v24 = vpop.f32.mrf.mxu2 }
 0x367   :  { %v2011_v4 = vadd.f32 %v2010_v41, %v4436_v26  ;;  %v2130_v17 = vpop.f32.mrf.mxu1 }
 0x368   :  { %v2380_v22 = vpop.f32.mrf.mxu3 }
 0x369   :  { %v2125_v37 = vadd.f32 %v2124_v38, %v2011_v4 }
 0x36b   :  { %v2284_v40 = vadd.f32 %v2283_v24, %v2125_v37 }
 0x36d   :  { %v2381_v7 = vadd.f32 %v2380_v22, %v2284_v40 }
 0x36e   :  { %v2015_v10 = vpop.f32.mrf.mxu0  ;;  %v2287_v61 = vpop.f32.mrf.mxu2 }
 0x36f   :  { %2443 = vst [vmem:[#allocation5] sm:$0xff] %v2381_v7  ;;  %v2016_v30 = vadd.f32 %v2015_v10, %v4451_v56  ;;  %v2136_v2 = vpop.f32.mrf.mxu1 }
 0x370   :  { %v2384_v18 = vpop.f32.mrf.mxu3 }
 0x371   :  { %v2131_v19 = vadd.f32 %v2130_v17, %v2016_v30 }
 0x373   :  { %v2288_v59 = vadd.f32 %v2287_v61, %v2131_v19 }
 0x375   :  { %v2385_v48 = vadd.f32 %v2384_v18, %v2288_v59 }
 0x376   :  { %v2020_v36 = vpop.f32.mrf.mxu0  ;;  %v2291_v57 = vpop.f32.mrf.mxu2 }
 0x377   :  { %2444 = vst [vmem:[#allocation5 + $0x8] sm:$0xff] %v2385_v48  ;;  %v2021_v26 = vadd.f32 %v2020_v36, %v4466_v11  ;;  %v2142_v33 = vpop.f32.mrf.mxu1 }
 0x378   :  { %v2388_v27 = vpop.f32.mrf.mxu3 }
 0x379   :  { %v2137_v29 = vadd.f32 %v2136_v2, %v2021_v26 }
 0x37b   :  { %v2292_v25 = vadd.f32 %v2291_v57, %v2137_v29 }
 0x37d   :  { %v2389_v63 = vadd.f32 %v2388_v27, %v2292_v25 }
 0x37e   :  { %v2025_v8 = vpop.f32.mrf.mxu0  ;;  %v2295_v20 = vpop.f32.mrf.mxu2 }
 0x37f   :  { %2445 = vst [vmem:[#allocation5 + $0x10] sm:$0xff] %v2389_v63  ;;  %v2026_v56 = vadd.f32 %v2025_v8, %v4481_v35  ;;  %v2148_v13 = vpop.f32.mrf.mxu1 }
 0x380   :  { %v2392_v44 = vpop.f32.mrf.mxu3 }
 0x381   :  { %v2143_v0 = vadd.f32 %v2142_v33, %v2026_v56 }
 0x383   :  { %v2296_v51 = vadd.f32 %v2295_v20, %v2143_v0 }
 0x385   :  { %v2393_v46 = vadd.f32 %v2392_v44, %v2296_v51 }
 0x386   :  { %v2030_v9 = vpop.f32.mrf.mxu0  ;;  %v2299_v60 = vpop.f32.mrf.mxu2 }
 0x387   :  { %2446 = vst [vmem:[#allocation5 + $0x18] sm:$0xff] %v2393_v46  ;;  %v2031_v11 = vadd.f32 %v2030_v9, %v4496_v3  ;;  %v2154_v62 = vpop.f32.mrf.mxu1 }
 0x388   :  { %v2396_v5 = vpop.f32.mrf.mxu3 }
 0x389   :  { %v2149_v47 = vadd.f32 %v2148_v13, %v2031_v11 }
 0x38b   :  { %v2300_v52 = vadd.f32 %v2299_v60, %v2149_v47 }
 0x38d   :  { %v2397_v12 = vadd.f32 %v2396_v5, %v2300_v52 }
 0x38e   :  { %v2035_v23 = vpop.f32.mrf.mxu0  ;;  %v2303_v14 = vpop.f32.mrf.mxu2 }
 0x38f   :  { %2447 = vst [vmem:[#allocation5 + $0x20] sm:$0xff] %v2397_v12  ;;  %v2036_v35 = vadd.f32 %v2035_v23, %v4511_v34  ;;  %v2160_v53 = vpop.f32.mrf.mxu1 }
 0x390   :  { %v2400_v1 = vpop.f32.mrf.mxu3 }
 0x391   :  { %v2155_v15 = vadd.f32 %v2154_v62, %v2036_v35 }
 0x393   :  { %v2304_v54 = vadd.f32 %v2303_v14, %v2155_v15 }
 0x395   :  { %v2401_v6 = vadd.f32 %v2400_v1, %v2304_v54 }
 0x396   :  { %v2040_v38 = vpop.f32.mrf.mxu0  ;;  %v2307_v31 = vpop.f32.mrf.mxu2 }
 0x397   :  { %2448 = vst [vmem:[#allocation5 + $0x28] sm:$0xff] %v2401_v6  ;;  %v2041_v3 = vadd.f32 %v2040_v38, %v4526_v45  ;;  %v2166_v28 = vpop.f32.mrf.mxu1 }
 0x398   :  { %v2404_v49 = vpop.f32.mrf.mxu3 }
 0x399   :  { %v2161_v41 = vadd.f32 %v2160_v53, %v2041_v3 }
 0x39b   :  { %v2308_v24 = vadd.f32 %v2307_v31, %v2161_v41 }
 0x39d   :  { %v2405_v4 = vadd.f32 %v2404_v49, %v2308_v24 }
 0x39e   :  { %v2045_v17 = vpop.f32.mrf.mxu0  ;;  %v2311_v22 = vpop.f32.mrf.mxu2 }
 0x39f   :  { %2449 = vst [vmem:[#allocation5 + $0x30] sm:$0xff] %v2405_v4  ;;  %v2046_v34 = vadd.f32 %v2045_v17, %v4541_v50  ;;  %v2172_v37 = vpop.f32.mrf.mxu1 }
 0x3a0   :  { %v2408_v40 = vpop.f32.mrf.mxu3 }
 0x3a1   :  { %v2167_v7 = vadd.f32 %v2166_v28, %v2046_v34 }
 0x3a3   :  { %v2312_v10 = vadd.f32 %v2311_v22, %v2167_v7 }
 0x3a5   :  { %v2409_v61 = vadd.f32 %v2408_v40, %v2312_v10 }
 0x3a6   :  { %v2050_v30 = vpop.f32.mrf.mxu0  ;;  %v2315_v2 = vpop.f32.mrf.mxu2 }
 0x3a7   :  { %2450 = vst [vmem:[#allocation5 + $0x38] sm:$0xff] %v2409_v61  ;;  %v2051_v45 = vadd.f32 %v2050_v30, %v4556_v39  ;;  %v2178_v18 = vpop.f32.mrf.mxu1 }
 0x3a8   :  { %v2412_v19 = vpop.f32.mrf.mxu3 }
 0x3a9   :  { %v2173_v59 = vadd.f32 %v2172_v37, %v2051_v45 }
 0x3ab   :  { %v2316_v48 = vadd.f32 %v2315_v2, %v2173_v59 }
 0x3ad   :  { %v2413_v36 = vadd.f32 %v2412_v19, %v2316_v48 }
 0x3ae   :  { %v2055_v57 = vpop.f32.mrf.mxu0  ;;  %v2319_v26 = vpop.f32.mrf.mxu2 }
 0x3af   :  { %2451 = vst [vmem:[#allocation5 + $0x40] sm:$0xff] %v2413_v36  ;;  %v2056_v50 = vadd.f32 %v2055_v57, %v4571_v58  ;;  %v2184_v33 = vpop.f32.mrf.mxu1 }
 0x3b0   :  { %v2416_v27 = vpop.f32.mrf.mxu3 }
 0x3b1   :  { %v2179_v29 = vadd.f32 %v2178_v18, %v2056_v50 }
 0x3b3   :  { %v2320_v25 = vadd.f32 %v2319_v26, %v2179_v29 }
 0x3b5   :  { %v2417_v63 = vadd.f32 %v2416_v27, %v2320_v25 }
 0x3b6   :  { %v2060_v8 = vpop.f32.mrf.mxu0  ;;  %v2323_v20 = vpop.f32.mrf.mxu2 }
 0x3b7   :  { %2452 = vst [vmem:[#allocation5 + $0x48] sm:$0xff] %v2417_v63  ;;  %v2061_v39 = vadd.f32 %v2060_v8, %v4586_v21  ;;  %v2190_v56 = vpop.f32.mrf.mxu1 }
 0x3b8   :  { %v2420_v13 = vpop.f32.mrf.mxu3 }
 0x3b9   :  { %v2185_v44 = vadd.f32 %v2184_v33, %v2061_v39 }
 0x3bb   :  { %v2324_v0 = vadd.f32 %v2323_v20, %v2185_v44 }
 0x3bd   :  { %v2421_v51 = vadd.f32 %v2420_v13, %v2324_v0 }
 0x3be   :  { %v2065_v46 = vpop.f32.mrf.mxu0  ;;  %v2327_v9 = vpop.f32.mrf.mxu2 }
 0x3bf   :  { %2453 = vst [vmem:[#allocation5 + $0x50] sm:$0xff] %v2421_v51  ;;  %v2066_v58 = vadd.f32 %v2065_v46, %v4601_v43  ;;  %v2196_v62 = vpop.f32.mrf.mxu1 }
 0x3c0   :  { %v2424_v60 = vpop.f32.mrf.mxu3 }
 0x3c1   :  { %v2191_v11 = vadd.f32 %v2190_v56, %v2066_v58 }
 0x3c3   :  { %v2328_v5 = vadd.f32 %v2327_v9, %v2191_v11 }
 0x3c5   :  { %v2425_v47 = vadd.f32 %v2424_v60, %v2328_v5 }
 0x3c6   :  { %v2070_v52 = vpop.f32.mrf.mxu0  ;;  %v2331_v12 = vpop.f32.mrf.mxu2 }
 0x3c7   :  { %2454 = vst [vmem:[#allocation5 + $0x58] sm:$0xff] %v2425_v47  ;;  %v2071_v21 = vadd.f32 %v2070_v52, %v4616_v16  ;;  %v2202_v53 = vpop.f32.mrf.mxu1 }
 0x3c8   :  { %v2428_v23 = vpop.f32.mrf.mxu3 }
 0x3c9   :  { %v2197_v14 = vadd.f32 %v2196_v62, %v2071_v21 }
 0x3cb   :  { %v2332_v35 = vadd.f32 %v2331_v12, %v2197_v14 }
 0x3cd   :  { %v2429_v1 = vadd.f32 %v2428_v23, %v2332_v35 }
 0x3ce   :  { %v2075_v15 = vpop.f32.mrf.mxu0  ;;  %v2335_v54 = vpop.f32.mrf.mxu2 }
 0x3cf   :  { %2455 = vst [vmem:[#allocation5 + $0x60] sm:$0xff] %v2429_v1  ;;  %v2076_v43 = vadd.f32 %v2075_v15, %v4629_v32  ;;  %v2208_v28 = vpop.f32.mrf.mxu1 }
 0x3d0   :  { %v2432_v6 = vpop.f32.mrf.mxu3 }
 0x3d1   :  { %v2203_v38 = vadd.f32 %v2202_v53, %v2076_v43 }
 0x3d3   :  { %v2336_v31 = vadd.f32 %v2335_v54, %v2203_v38 }
 0x3d5   :  { %v2433_v3 = vadd.f32 %v2432_v6, %v2336_v31 }
 0x3d6   :  { %v2080_v49 = vpop.f32.mrf.mxu0  ;;  %v2339_v16 = vpop.f32.mrf.mxu2 }
 0x3d7   :  { %2456 = vst [vmem:[#allocation5 + $0x68] sm:$0xff] %v2433_v3  ;;  %v2081_v41 = vadd.f32 %v2080_v49, %v4640_v42  ;;  %v2214_v40 = vpop.f32.mrf.mxu1 }
 0x3d8   :  { %v2436_v4 = vpop.f32.mrf.mxu3 }
 0x3d9   :  { %v2209_v24 = vadd.f32 %v2208_v28, %v2081_v41 }
 0x3db   :  { %v2340_v17 = vadd.f32 %v2339_v16, %v2209_v24 }
 0x3dd   :  { %v2437_v22 = vadd.f32 %v2436_v4, %v2340_v17 }
 0x3de   :  { %v2085_v34 = vpop.f32.mrf.mxu0  ;;  %v2343_v7 = vpop.f32.mrf.mxu2 }
 0x3df   :  { %2457 = vst [vmem:[#allocation5 + $0x70] sm:$0xff] %v2437_v22  ;;  %v2086_v37 = vadd.f32 %v2085_v34, %v4647_v55 }
 0x3e0   :  { %v2440_v42 = vpop.f32.mrf.mxu3 }
 0x3e1   :  { %v2215_v32 = vadd.f32 %v2214_v40, %v2086_v37 }
 0x3e3   :  { %v2344_v10 = vadd.f32 %v2343_v7, %v2215_v32 }
 0x3e5   :  { %v2441_v61 = vadd.f32 %v2440_v42, %v2344_v10 }
 0x3e7   :  { %2458 = vst [vmem:[#allocation5 + $0x78] sm:$0xff] %v2441_v61 }
 0x3e8   :  { %2471 = dma.vmem_to_hbm [thread:$0]  %s2464_s8, 2048, %s2466_s11, [#allocation4], %s2731_s14, %s2731_s14, %s2732_s15  }
 0x3e9   :  { %2728 = dma.done.wait [#allocation4], 2048  }
 0x3ea   :  { %2729 = vsyncadd [#allocation4], 4294965248 }
 0x3eb   :  { %2476 = vsyncpa [#allocation3], 1 }
 0x3ec   :  { %2477 = vsyncpa [#allocation4], 1 }

</bundles_post_ra>
